<compile_context>
chip_gen: v7x
topology: tpu7x:2x2x1
jax: 0.10.0
libtpu: 0.0.40
codegen_flags: <defaults>
</compile_context>

<pallas_src>
import jax
import jax.numpy as jnp
from jax.experimental import pallas as pl
from jax.experimental.pallas import tpu as pltpu

# ---------------- model config (small ViT, forward-compatible with the module) -------------
IMG = 32
PATCH = 16
IN_CH = 3
EMBED = 32
DEPTH = 2
HEADS = 4
HEAD_DIM = EMBED // HEADS
MLP_HIDDEN = 4 * EMBED
NUM_PATCHES = (IMG // PATCH) ** 2
SEQ = NUM_PATCHES + 1          # +1 cls token
NUM_CLASSES = 5                # ['Normal', 'Cyst', 'Mass', 'Fluid', 'Other Anomaly']
LN_EPS = 1e-5
PATCH_DIM = IN_CH * PATCH * PATCH


# ---------------------------------- in-kernel helpers ---------------------------------------
def _ln(x, g, b):
    """Row-wise LayerNorm over the last dim (biased variance, eps=1e-5)."""
    x = x.astype(jnp.float32)
    mu = jnp.mean(x, axis=-1, keepdims=True)
    var = jnp.mean((x - mu) ** 2, axis=-1, keepdims=True)
    return (x - mu) * jax.lax.rsqrt(var + LN_EPS) * g + b


def _mxu_dot(a, w):
    """bf16 MXU operands, f32 accumulation (v5e-friendly, harmless on v6e/v7x)."""
    return jnp.dot(a.astype(jnp.bfloat16), w.astype(jnp.bfloat16),
                   preferred_element_type=jnp.float32)


# ---------------------------------- fused forward kernel ------------------------------------
def _vit_fused_kernel(patches_ref, combo_ref, patch_w_ref,
                      ln1_g_ref, ln1_b_ref, qkv_w_ref, qkv_b_ref,
                      proj_w_ref, proj_b_ref, ln2_g_ref, ln2_b_ref,
                      fc1_w_ref, fc1_b_ref, fc2_w_ref, fc2_b_ref,
                      norm_g_ref, norm_b_ref, hln_g_ref, hln_b_ref,
                      hw_ref, hb_ref, out_ref):
    """One sample per grid step: everything VMEM-resident, DEPTH/HEADS statically unrolled."""
    scale = HEAD_DIM ** -0.5

    # ---- patch embedding (Conv2d k=s=16 == patch matmul); row 0 of patches is zeros and
    # ---- combo folds cls + pos (row 0) / patch_b + pos (rows 1..) into one additive term.
    patches = patches_ref[0]                                   # [SEQ, C*P*P]
    h = _mxu_dot(patches, patch_w_ref[...]) + combo_ref[0]     # [SEQ, EMBED] f32

    # ---- pre-norm transformer blocks ----
    for d in range(DEPTH):
        # fused LN1 + QKV projection
        y = _ln(h, ln1_g_ref[d], ln1_b_ref[d])
        qkv = _mxu_dot(y, qkv_w_ref[d]) + qkv_b_ref[d]         # [SEQ, 3*EMBED]
        proj_w = proj_w_ref[d]                                 # [EMBED, EMBED]

        attn = jnp.zeros((SEQ, EMBED), jnp.float32)
        for hh in range(HEADS):
            lo = hh * HEAD_DIM
            q = qkv[:, lo:lo + HEAD_DIM]                                   # [SEQ, Dh]
            k = qkv[:, EMBED + lo:EMBED + lo + HEAD_DIM]
            v = qkv[:, 2 * EMBED + lo:2 * EMBED + lo + HEAD_DIM]
            s = jax.lax.dot_general(q, k, (((1,), (1,)), ((), ())),
                                    preferred_element_type=jnp.float32) * scale   # [SEQ, SEQ]
            s = s - jnp.max(s, axis=-1, keepdims=True)
            p = jnp.exp(s)
            p = p / jnp.sum(p, axis=-1, keepdims=True)
            o = jnp.dot(p, v, preferred_element_type=jnp.float32)          # [SEQ, Dh]
            # fold output projection per head: concat_h(o_h) @ W == sum_h o_h @ W[rows_h]
            attn = attn + jnp.dot(o, proj_w[lo:lo + HEAD_DIM, :],
                                  preferred_element_type=jnp.float32)
        h = h + attn + proj_b_ref[d]                                       # residual

        # fused LN2 + MLP
        y = _ln(h, ln2_g_ref[d], ln2_b_ref[d])
        y = _mxu_dot(y, fc1_w_ref[d]) + fc1_b_ref[d]
        # TODO(synk): PyTorch nn.GELU default is erf-based; tanh approximation used for
        #             robust Mosaic lowering (numerically near-identical).
        y = jax.nn.gelu(y, approximate=True)
        y = _mxu_dot(y, fc2_w_ref[d]) + fc2_b_ref[d]
        h = h + y                                                          # residual

    # ---- final backbone LayerNorm on cls token, then head: LN -> Linear(D,5) -> Sigmoid ----
    cls_feat = _ln(h[0:1, :], norm_g_ref[...], norm_b_ref[...])            # [1, EMBED]
    z = _ln(cls_feat, hln_g_ref[...], hln_b_ref[...])
    logits = jnp.dot(z, hw_ref[...], preferred_element_type=jnp.float32) + hb_ref[...]
    out_ref[0] = jax.nn.sigmoid(logits).astype(out_ref.dtype)              # [1, NUM_CLASSES]


# ---------------------------------- parameters ----------------------------------------------
def init_params(key):
    std = 0.02

    def nxt():
        nonlocal key
        key, sub = jax.random.split(key)
        return sub

    def rand(shape, dtype=jnp.float32):
        return (jax.random.normal(nxt(), shape, jnp.float32) * std).astype(dtype)

    return {
        # patch-embed Conv2d(3, D, 16, stride=16) as a [C*P*P, D] matmul weight
        # (patch flattened in (c, ph, pw) order, matching Conv2d semantics).
        "patch_w": rand((PATCH_DIM, EMBED), jnp.bfloat16),
        "patch_b": jnp.zeros((1, EMBED), jnp.float32),
        "cls": rand((1, 1, EMBED)),
        "pos": rand((1, SEQ, EMBED)),
        # per-block weights stacked along a leading DEPTH axis
        "ln1_g": jnp.ones((DEPTH, 1, EMBED), jnp.float32),
        "ln1_b": jnp.zeros((DEPTH, 1, EMBED), jnp.float32),
        "qkv_w": rand((DEPTH, EMBED, 3 * EMBED), jnp.bfloat16),
        "qkv_b": jnp.zeros((DEPTH, 1, 3 * EMBED), jnp.float32),
        "proj_w": rand((DEPTH, EMBED, EMBED), jnp.float32),
        "proj_b": jnp.zeros((DEPTH, 1, EMBED), jnp.float32),
        "ln2_g": jnp.ones((DEPTH, 1, EMBED), jnp.float32),
        "ln2_b": jnp.zeros((DEPTH, 1, EMBED), jnp.float32),
        "fc1_w": rand((DEPTH, EMBED, MLP_HIDDEN), jnp.bfloat16),
        "fc1_b": jnp.zeros((DEPTH, 1, MLP_HIDDEN), jnp.float32),
        "fc2_w": rand((DEPTH, MLP_HIDDEN, EMBED), jnp.bfloat16),
        "fc2_b": jnp.zeros((DEPTH, 1, EMBED), jnp.float32),
        # final backbone norm + head (LayerNorm -> Linear -> Sigmoid)
        "norm_g": jnp.ones((1, EMBED), jnp.float32),
        "norm_b": jnp.zeros((1, EMBED), jnp.float32),
        "head_ln_g": jnp.ones((1, EMBED), jnp.float32),
        "head_ln_b": jnp.zeros((1, EMBED), jnp.float32),
        "head_w": rand((EMBED, NUM_CLASSES), jnp.float32),
        "head_b": jnp.zeros((1, NUM_CLASSES), jnp.float32),
    }


# ---------------------------------- forward pass --------------------------------------------
def forward(params, x):
    """x: NCHW float32 [B, 3, 32, 32]  ->  sigmoid class scores [B, 5]."""
    B = x.shape[0]
    gh = gw = IMG // PATCH

    # ---- XLA glue: NCHW -> [B, NUM_PATCHES, C*P*P] patch matrix, with a leading zero row
    # ---- per sample standing in for the cls position (its value comes from `combo`).
    patches = x.reshape(B, IN_CH, gh, PATCH, gw, PATCH)
    patches = patches.transpose(0, 2, 4, 1, 3, 5).reshape(B, NUM_PATCHES, PATCH_DIM)
    patches = jnp.concatenate(
        [jnp.zeros((B, 1, PATCH_DIM), patches.dtype), patches], axis=1)          # [B, SEQ, PD]

    # combo[0] = cls + pos[0]; combo[i>=1] = patch_b + pos[i]   (tiny param-only precompute)
    combo = params["pos"] + jnp.concatenate(
        [params["cls"],
         jnp.broadcast_to(params["patch_b"][None], (1, NUM_PATCHES, EMBED))], axis=1)

    weights = [
        params["patch_w"],
        params["ln1_g"], params["ln1_b"], params["qkv_w"], params["qkv_b"],
        params["proj_w"], params["proj_b"], params["ln2_g"], params["ln2_b"],
        params["fc1_w"], params["fc1_b"], params["fc2_w"], params["fc2_b"],
        params["norm_g"], params["norm_b"],
        params["head_ln_g"], params["head_ln_b"], params["head_w"], params["head_b"],
    ]

    def _resident_spec(a):
        """Full array in VMEM, same block for every grid step (stays resident)."""
        zeros = (0,) * a.ndim
        return pl.BlockSpec(a.shape, lambda b: zeros)

    out = pl.pallas_call(
        _vit_fused_kernel,
        out_shape=jax.ShapeDtypeStruct((B, 1, NUM_CLASSES), jnp.float32),
        grid=(B,),
        in_specs=[pl.BlockSpec((1, SEQ, PATCH_DIM), lambda b: (b, 0, 0)),
                  _resident_spec(combo)] + [_resident_spec(w) for w in weights],
        out_specs=pl.BlockSpec((1, 1, NUM_CLASSES), lambda b: (b, 0, 0)),
        compiler_params=pltpu.CompilerParams(dimension_semantics=("parallel",)),
    )(patches, combo, *weights)

    return out.reshape(B, NUM_CLASSES)


# ---------------------------------------- main ----------------------------------------------
if __name__ == "__main__":
    key = jax.random.PRNGKey(0)
    pkey, xkey = jax.random.split(key)
    params = init_params(pkey)
    x = jax.random.normal(xkey, (2, IN_CH, IMG, IMG), jnp.float32)            # NCHW

    out = jax.jit(forward)(params, x)
    out = jax.block_until_ready(out)

    assert out.shape == (2, NUM_CLASSES), out.shape
    assert bool(jnp.all(jnp.isfinite(out)))
    assert bool(jnp.all((out >= 0.0) & (out <= 1.0)))   # sigmoid range
    print("KERNEL_OK")
</pallas_src>

<mosaic_0001>
module attributes {stable_mosaic.version = 11 : i64} {
  func.func @_vit_fused_kernel(%arg0: i32, %arg1: memref<1x5x768xf32, #tpu.memory_space<vmem>>, %arg2: memref<1x5x32xf32, #tpu.memory_space<vmem>>, %arg3: memref<768x32xbf16, #tpu.memory_space<vmem>>, %arg4: memref<2x1x32xf32, #tpu.memory_space<vmem>>, %arg5: memref<2x1x32xf32, #tpu.memory_space<vmem>>, %arg6: memref<2x32x96xbf16, #tpu.memory_space<vmem>>, %arg7: memref<2x1x96xf32, #tpu.memory_space<vmem>>, %arg8: memref<2x32x32xf32, #tpu.memory_space<vmem>>, %arg9: memref<2x1x32xf32, #tpu.memory_space<vmem>>, %arg10: memref<2x1x32xf32, #tpu.memory_space<vmem>>, %arg11: memref<2x1x32xf32, #tpu.memory_space<vmem>>, %arg12: memref<2x32x128xbf16, #tpu.memory_space<vmem>>, %arg13: memref<2x1x128xf32, #tpu.memory_space<vmem>>, %arg14: memref<2x128x32xbf16, #tpu.memory_space<vmem>>, %arg15: memref<2x1x32xf32, #tpu.memory_space<vmem>>, %arg16: memref<1x32xf32, #tpu.memory_space<vmem>>, %arg17: memref<1x32xf32, #tpu.memory_space<vmem>>, %arg18: memref<1x32xf32, #tpu.memory_space<vmem>>, %arg19: memref<1x32xf32, #tpu.memory_space<vmem>>, %arg20: memref<32x5xf32, #tpu.memory_space<vmem>>, %arg21: memref<1x5xf32, #tpu.memory_space<vmem>>, %arg22: memref<1x1x5xf32, #tpu.memory_space<vmem>>) attributes {dimension_semantics = [#tpu.dimension_semantics<parallel>], iteration_bounds = array<i64: 2>, scalar_prefetch = 0 : i64, scratch_operands = 0 : i64, tpu.core_type = #tpu.core_type<tc>, window_params = [{transform_indices = @transform_0, window_bounds = array<i64: 1, 5, 768>}, {pipeline_mode = #tpu.pipeline_mode<synchronous>, transform_indices = @transform_1, window_bounds = array<i64: 1, 5, 32>}, {pipeline_mode = #tpu.pipeline_mode<synchronous>, transform_indices = @transform_2, window_bounds = array<i64: 768, 32>}, {pipeline_mode = #tpu.pipeline_mode<synchronous>, transform_indices = @transform_3, window_bounds = array<i64: 2, 1, 32>}, {pipeline_mode = #tpu.pipeline_mode<synchronous>, transform_indices = @transform_4, window_bounds = array<i64: 2, 1, 32>}, {pipeline_mode = #tpu.pipeline_mode<synchronous>, transform_indices = @transform_5, window_bounds = array<i64: 2, 32, 96>}, {pipeline_mode = #tpu.pipeline_mode<synchronous>, transform_indices = @transform_6, window_bounds = array<i64: 2, 1, 96>}, {pipeline_mode = #tpu.pipeline_mode<synchronous>, transform_indices = @transform_7, window_bounds = array<i64: 2, 32, 32>}, {pipeline_mode = #tpu.pipeline_mode<synchronous>, transform_indices = @transform_8, window_bounds = array<i64: 2, 1, 32>}, {pipeline_mode = #tpu.pipeline_mode<synchronous>, transform_indices = @transform_9, window_bounds = array<i64: 2, 1, 32>}, {pipeline_mode = #tpu.pipeline_mode<synchronous>, transform_indices = @transform_10, window_bounds = array<i64: 2, 1, 32>}, {pipeline_mode = #tpu.pipeline_mode<synchronous>, transform_indices = @transform_11, window_bounds = array<i64: 2, 32, 128>}, {pipeline_mode = #tpu.pipeline_mode<synchronous>, transform_indices = @transform_12, window_bounds = array<i64: 2, 1, 128>}, {pipeline_mode = #tpu.pipeline_mode<synchronous>, transform_indices = @transform_13, window_bounds = array<i64: 2, 128, 32>}, {pipeline_mode = #tpu.pipeline_mode<synchronous>, transform_indices = @transform_14, window_bounds = array<i64: 2, 1, 32>}, {pipeline_mode = #tpu.pipeline_mode<synchronous>, transform_indices = @transform_15, window_bounds = array<i64: 1, 32>}, {pipeline_mode = #tpu.pipeline_mode<synchronous>, transform_indices = @transform_16, window_bounds = array<i64: 1, 32>}, {pipeline_mode = #tpu.pipeline_mode<synchronous>, transform_indices = @transform_17, window_bounds = array<i64: 1, 32>}, {pipeline_mode = #tpu.pipeline_mode<synchronous>, transform_indices = @transform_18, window_bounds = array<i64: 1, 32>}, {pipeline_mode = #tpu.pipeline_mode<synchronous>, transform_indices = @transform_19, window_bounds = array<i64: 32, 5>}, {pipeline_mode = #tpu.pipeline_mode<synchronous>, transform_indices = @transform_20, window_bounds = array<i64: 1, 5>}, {transform_indices = @transform_21, window_bounds = array<i64: 1, 1, 5>}]} {
    %c0 = arith.constant 0 : index
    %c0_0 = arith.constant 0 : index
    %c0_1 = arith.constant 0 : index
    %0 = vector.load %arg1[%c0, %c0_0, %c0_1] : memref<1x5x768xf32, #tpu.memory_space<vmem>>, vector<1x5x768xf32>
    %1 = vector.shape_cast %0 : vector<1x5x768xf32> to vector<5x768xf32>
    %c0_2 = arith.constant 0 : index
    %c0_3 = arith.constant 0 : index
    %2 = vector.load %arg3[%c0_2, %c0_3] : memref<768x32xbf16, #tpu.memory_space<vmem>>, vector<768x32xbf16>
    %3 = arith.truncf %1 : vector<5x768xf32> to vector<5x768xbf16>
    %cst = arith.constant dense<0.000000e+00> : vector<5x32xf32>
    %4 = tpu.matmul %3, %2, %cst {dimension_numbers = #tpu.dot_dimension_numbers<[1], [0], [0], [1], [0, 0, 1, 1], [], []>} : vector<5x768xbf16>, vector<768x32xbf16>, vector<5x32xf32> -> vector<5x32xf32>
    %c0_4 = arith.constant 0 : index
    %c0_5 = arith.constant 0 : index
    %c0_6 = arith.constant 0 : index
    %5 = vector.load %arg2[%c0_4, %c0_5, %c0_6] : memref<1x5x32xf32, #tpu.memory_space<vmem>>, vector<1x5x32xf32>
    %6 = vector.shape_cast %5 : vector<1x5x32xf32> to vector<5x32xf32>
    %7 = arith.addf %4, %6 : vector<5x32xf32>
    %c0_7 = arith.constant 0 : index
    %c0_8 = arith.constant 0 : index
    %c0_9 = arith.constant 0 : index
    %8 = vector.load %arg4[%c0_7, %c0_8, %c0_9] : memref<2x1x32xf32, #tpu.memory_space<vmem>>, vector<1x1x32xf32>
    %9 = vector.shape_cast %8 : vector<1x1x32xf32> to vector<1x32xf32>
    %c0_10 = arith.constant 0 : index
    %c0_11 = arith.constant 0 : index
    %c0_12 = arith.constant 0 : index
    %10 = vector.load %arg5[%c0_10, %c0_11, %c0_12] : memref<2x1x32xf32, #tpu.memory_space<vmem>>, vector<1x1x32xf32>
    %11 = vector.shape_cast %10 : vector<1x1x32xf32> to vector<1x32xf32>
    %cst_13 = arith.constant dense<0.000000e+00> : vector<5xf32>
    %12 = vector.multi_reduction <add>, %7, %cst_13 [1] : vector<5x32xf32> to vector<5xf32>
    %13 = vector.shape_cast %12 : vector<5xf32> to vector<5x1xf32>
    %cst_14 = arith.constant 3.200000e+01 : f32
    %14 = vector.broadcast %cst_14 : f32 to vector<5x1xf32>
    %15 = arith.divf %13, %14 : vector<5x1xf32>
    %16 = vector.broadcast %15 : vector<5x1xf32> to vector<5x32xf32>
    %17 = arith.subf %7, %16 : vector<5x32xf32>
    %18 = arith.mulf %17, %17 : vector<5x32xf32>
    %cst_15 = arith.constant dense<0.000000e+00> : vector<5xf32>
    %19 = vector.multi_reduction <add>, %18, %cst_15 [1] : vector<5x32xf32> to vector<5xf32>
    %20 = vector.shape_cast %19 : vector<5xf32> to vector<5x1xf32>
    %cst_16 = arith.constant 3.200000e+01 : f32
    %21 = vector.broadcast %cst_16 : f32 to vector<5x1xf32>
    %22 = arith.divf %20, %21 : vector<5x1xf32>
    %23 = vector.broadcast %15 : vector<5x1xf32> to vector<5x32xf32>
    %24 = arith.subf %7, %23 : vector<5x32xf32>
    %cst_17 = arith.constant 9.99999974E-6 : f32
    %25 = vector.broadcast %cst_17 : f32 to vector<5x1xf32>
    %26 = arith.addf %22, %25 : vector<5x1xf32>
    %27 = math.rsqrt %26 : vector<5x1xf32>
    %28 = vector.broadcast %27 : vector<5x1xf32> to vector<5x32xf32>
    %29 = arith.mulf %24, %28 : vector<5x32xf32>
    %30 = vector.broadcast %9 : vector<1x32xf32> to vector<5x32xf32>
    %31 = arith.mulf %29, %30 : vector<5x32xf32>
    %32 = vector.broadcast %11 : vector<1x32xf32> to vector<5x32xf32>
    %33 = arith.addf %31, %32 : vector<5x32xf32>
    %c0_18 = arith.constant 0 : index
    %c0_19 = arith.constant 0 : index
    %c0_20 = arith.constant 0 : index
    %34 = vector.load %arg6[%c0_18, %c0_19, %c0_20] : memref<2x32x96xbf16, #tpu.memory_space<vmem>>, vector<1x32x96xbf16>
    %35 = vector.shape_cast %34 : vector<1x32x96xbf16> to vector<32x96xbf16>
    %36 = arith.truncf %33 : vector<5x32xf32> to vector<5x32xbf16>
    %cst_21 = arith.constant dense<0.000000e+00> : vector<5x96xf32>
    %37 = tpu.matmul %36, %35, %cst_21 {dimension_numbers = #tpu.dot_dimension_numbers<[1], [0], [0], [1], [0, 0, 1, 1], [], []>} : vector<5x32xbf16>, vector<32x96xbf16>, vector<5x96xf32> -> vector<5x96xf32>
    %c0_22 = arith.constant 0 : index
    %c0_23 = arith.constant 0 : index
    %c0_24 = arith.constant 0 : index
    %38 = vector.load %arg7[%c0_22, %c0_23, %c0_24] : memref<2x1x96xf32, #tpu.memory_space<vmem>>, vector<1x1x96xf32>
    %39 = vector.shape_cast %38 : vector<1x1x96xf32> to vector<1x96xf32>
    %40 = vector.broadcast %39 : vector<1x96xf32> to vector<5x96xf32>
    %41 = arith.addf %37, %40 : vector<5x96xf32>
    %c0_25 = arith.constant 0 : index
    %c0_26 = arith.constant 0 : index
    %c0_27 = arith.constant 0 : index
    %42 = vector.load %arg8[%c0_25, %c0_26, %c0_27] : memref<2x32x32xf32, #tpu.memory_space<vmem>>, vector<1x32x32xf32>
    %43 = vector.shape_cast %42 : vector<1x32x32xf32> to vector<32x32xf32>
    %cst_28 = arith.constant 0.000000e+00 : f32
    %44 = vector.broadcast %cst_28 : f32 to vector<5x32xf32>
    %45 = vector.extract_strided_slice %41 {offsets = [0, 0], sizes = [5, 8], strides = [1, 1]} : vector<5x96xf32> to vector<5x8xf32>
    %46 = vector.extract_strided_slice %41 {offsets = [0, 32], sizes = [5, 8], strides = [1, 1]} : vector<5x96xf32> to vector<5x8xf32>
    %47 = vector.extract_strided_slice %41 {offsets = [0, 64], sizes = [5, 8], strides = [1, 1]} : vector<5x96xf32> to vector<5x8xf32>
    %cst_29 = arith.constant dense<0.000000e+00> : vector<5x5xf32>
    %48 = tpu.matmul %45, %46, %cst_29 {dimension_numbers = #tpu.dot_dimension_numbers<[1], [1], [0], [0], [0, 0, 1, 0], [], []>} : vector<5x8xf32>, vector<5x8xf32>, vector<5x5xf32> -> vector<5x5xf32>
    %cst_30 = arith.constant 0.353553385 : f32
    %49 = vector.broadcast %cst_30 : f32 to vector<5x5xf32>
    %50 = arith.mulf %48, %49 : vector<5x5xf32>
    %cst_31 = arith.constant dense<0xFF800000> : vector<5xf32>
    %51 = vector.multi_reduction <maximumf>, %50, %cst_31 [1] : vector<5x5xf32> to vector<5xf32>
    %52 = vector.shape_cast %51 : vector<5xf32> to vector<5x1xf32>
    %53 = vector.broadcast %52 : vector<5x1xf32> to vector<5x5xf32>
    %54 = arith.subf %50, %53 : vector<5x5xf32>
    %55 = math.exp %54 : vector<5x5xf32>
    %cst_32 = arith.constant dense<0.000000e+00> : vector<5xf32>
    %56 = vector.multi_reduction <add>, %55, %cst_32 [1] : vector<5x5xf32> to vector<5xf32>
    %57 = vector.shape_cast %56 : vector<5xf32> to vector<5x1xf32>
    %58 = vector.broadcast %57 : vector<5x1xf32> to vector<5x5xf32>
    %59 = arith.divf %55, %58 : vector<5x5xf32>
    %cst_33 = arith.constant dense<0.000000e+00> : vector<5x8xf32>
    %60 = tpu.matmul %59, %47, %cst_33 {dimension_numbers = #tpu.dot_dimension_numbers<[1], [0], [0], [1], [0, 0, 1, 1], [], []>} : vector<5x5xf32>, vector<5x8xf32>, vector<5x8xf32> -> vector<5x8xf32>
    %61 = vector.extract_strided_slice %43 {offsets = [0, 0], sizes = [8, 32], strides = [1, 1]} : vector<32x32xf32> to vector<8x32xf32>
    %cst_34 = arith.constant dense<0.000000e+00> : vector<5x32xf32>
    %62 = tpu.matmul %60, %61, %cst_34 {dimension_numbers = #tpu.dot_dimension_numbers<[1], [0], [0], [1], [0, 0, 1, 1], [], []>} : vector<5x8xf32>, vector<8x32xf32>, vector<5x32xf32> -> vector<5x32xf32>
    %63 = arith.addf %44, %62 : vector<5x32xf32>
    %64 = vector.extract_strided_slice %41 {offsets = [0, 8], sizes = [5, 8], strides = [1, 1]} : vector<5x96xf32> to vector<5x8xf32>
    %65 = vector.extract_strided_slice %41 {offsets = [0, 40], sizes = [5, 8], strides = [1, 1]} : vector<5x96xf32> to vector<5x8xf32>
    %66 = vector.extract_strided_slice %41 {offsets = [0, 72], sizes = [5, 8], strides = [1, 1]} : vector<5x96xf32> to vector<5x8xf32>
    %cst_35 = arith.constant dense<0.000000e+00> : vector<5x5xf32>
    %67 = tpu.matmul %64, %65, %cst_35 {dimension_numbers = #tpu.dot_dimension_numbers<[1], [1], [0], [0], [0, 0, 1, 0], [], []>} : vector<5x8xf32>, vector<5x8xf32>, vector<5x5xf32> -> vector<5x5xf32>
    %cst_36 = arith.constant 0.353553385 : f32
    %68 = vector.broadcast %cst_36 : f32 to vector<5x5xf32>
    %69 = arith.mulf %67, %68 : vector<5x5xf32>
    %cst_37 = arith.constant dense<0xFF800000> : vector<5xf32>
    %70 = vector.multi_reduction <maximumf>, %69, %cst_37 [1] : vector<5x5xf32> to vector<5xf32>
    %71 = vector.shape_cast %70 : vector<5xf32> to vector<5x1xf32>
    %72 = vector.broadcast %71 : vector<5x1xf32> to vector<5x5xf32>
    %73 = arith.subf %69, %72 : vector<5x5xf32>
    %74 = math.exp %73 : vector<5x5xf32>
    %cst_38 = arith.constant dense<0.000000e+00> : vector<5xf32>
    %75 = vector.multi_reduction <add>, %74, %cst_38 [1] : vector<5x5xf32> to vector<5xf32>
    %76 = vector.shape_cast %75 : vector<5xf32> to vector<5x1xf32>
    %77 = vector.broadcast %76 : vector<5x1xf32> to vector<5x5xf32>
    %78 = arith.divf %74, %77 : vector<5x5xf32>
    %cst_39 = arith.constant dense<0.000000e+00> : vector<5x8xf32>
    %79 = tpu.matmul %78, %66, %cst_39 {dimension_numbers = #tpu.dot_dimension_numbers<[1], [0], [0], [1], [0, 0, 1, 1], [], []>} : vector<5x5xf32>, vector<5x8xf32>, vector<5x8xf32> -> vector<5x8xf32>
    %80 = vector.extract_strided_slice %43 {offsets = [8, 0], sizes = [8, 32], strides = [1, 1]} : vector<32x32xf32> to vector<8x32xf32>
    %cst_40 = arith.constant dense<0.000000e+00> : vector<5x32xf32>
    %81 = tpu.matmul %79, %80, %cst_40 {dimension_numbers = #tpu.dot_dimension_numbers<[1], [0], [0], [1], [0, 0, 1, 1], [], []>} : vector<5x8xf32>, vector<8x32xf32>, vector<5x32xf32> -> vector<5x32xf32>
    %82 = arith.addf %63, %81 : vector<5x32xf32>
    %83 = vector.extract_strided_slice %41 {offsets = [0, 16], sizes = [5, 8], strides = [1, 1]} : vector<5x96xf32> to vector<5x8xf32>
    %84 = vector.extract_strided_slice %41 {offsets = [0, 48], sizes = [5, 8], strides = [1, 1]} : vector<5x96xf32> to vector<5x8xf32>
    %85 = vector.extract_strided_slice %41 {offsets = [0, 80], sizes = [5, 8], strides = [1, 1]} : vector<5x96xf32> to vector<5x8xf32>
    %cst_41 = arith.constant dense<0.000000e+00> : vector<5x5xf32>
    %86 = tpu.matmul %83, %84, %cst_41 {dimension_numbers = #tpu.dot_dimension_numbers<[1], [1], [0], [0], [0, 0, 1, 0], [], []>} : vector<5x8xf32>, vector<5x8xf32>, vector<5x5xf32> -> vector<5x5xf32>
    %cst_42 = arith.constant 0.353553385 : f32
    %87 = vector.broadcast %cst_42 : f32 to vector<5x5xf32>
    %88 = arith.mulf %86, %87 : vector<5x5xf32>
    %cst_43 = arith.constant dense<0xFF800000> : vector<5xf32>
    %89 = vector.multi_reduction <maximumf>, %88, %cst_43 [1] : vector<5x5xf32> to vector<5xf32>
    %90 = vector.shape_cast %89 : vector<5xf32> to vector<5x1xf32>
    %91 = vector.broadcast %90 : vector<5x1xf32> to vector<5x5xf32>
    %92 = arith.subf %88, %91 : vector<5x5xf32>
    %93 = math.exp %92 : vector<5x5xf32>
    %cst_44 = arith.constant dense<0.000000e+00> : vector<5xf32>
    %94 = vector.multi_reduction <add>, %93, %cst_44 [1] : vector<5x5xf32> to vector<5xf32>
    %95 = vector.shape_cast %94 : vector<5xf32> to vector<5x1xf32>
    %96 = vector.broadcast %95 : vector<5x1xf32> to vector<5x5xf32>
    %97 = arith.divf %93, %96 : vector<5x5xf32>
    %cst_45 = arith.constant dense<0.000000e+00> : vector<5x8xf32>
    %98 = tpu.matmul %97, %85, %cst_45 {dimension_numbers = #tpu.dot_dimension_numbers<[1], [0], [0], [1], [0, 0, 1, 1], [], []>} : vector<5x5xf32>, vector<5x8xf32>, vector<5x8xf32> -> vector<5x8xf32>
    %99 = vector.extract_strided_slice %43 {offsets = [16, 0], sizes = [8, 32], strides = [1, 1]} : vector<32x32xf32> to vector<8x32xf32>
    %cst_46 = arith.constant dense<0.000000e+00> : vector<5x32xf32>
    %100 = tpu.matmul %98, %99, %cst_46 {dimension_numbers = #tpu.dot_dimension_numbers<[1], [0], [0], [1], [0, 0, 1, 1], [], []>} : vector<5x8xf32>, vector<8x32xf32>, vector<5x32xf32> -> vector<5x32xf32>
    %101 = arith.addf %82, %100 : vector<5x32xf32>
    %102 = vector.extract_strided_slice %41 {offsets = [0, 24], sizes = [5, 8], strides = [1, 1]} : vector<5x96xf32> to vector<5x8xf32>
    %103 = vector.extract_strided_slice %41 {offsets = [0, 56], sizes = [5, 8], strides = [1, 1]} : vector<5x96xf32> to vector<5x8xf32>
    %104 = vector.extract_strided_slice %41 {offsets = [0, 88], sizes = [5, 8], strides = [1, 1]} : vector<5x96xf32> to vector<5x8xf32>
    %cst_47 = arith.constant dense<0.000000e+00> : vector<5x5xf32>
    %105 = tpu.matmul %102, %103, %cst_47 {dimension_numbers = #tpu.dot_dimension_numbers<[1], [1], [0], [0], [0, 0, 1, 0], [], []>} : vector<5x8xf32>, vector<5x8xf32>, vector<5x5xf32> -> vector<5x5xf32>
    %cst_48 = arith.constant 0.353553385 : f32
    %106 = vector.broadcast %cst_48 : f32 to vector<5x5xf32>
    %107 = arith.mulf %105, %106 : vector<5x5xf32>
    %cst_49 = arith.constant dense<0xFF800000> : vector<5xf32>
    %108 = vector.multi_reduction <maximumf>, %107, %cst_49 [1] : vector<5x5xf32> to vector<5xf32>
    %109 = vector.shape_cast %108 : vector<5xf32> to vector<5x1xf32>
    %110 = vector.broadcast %109 : vector<5x1xf32> to vector<5x5xf32>
    %111 = arith.subf %107, %110 : vector<5x5xf32>
    %112 = math.exp %111 : vector<5x5xf32>
    %cst_50 = arith.constant dense<0.000000e+00> : vector<5xf32>
    %113 = vector.multi_reduction <add>, %112, %cst_50 [1] : vector<5x5xf32> to vector<5xf32>
    %114 = vector.shape_cast %113 : vector<5xf32> to vector<5x1xf32>
    %115 = vector.broadcast %114 : vector<5x1xf32> to vector<5x5xf32>
    %116 = arith.divf %112, %115 : vector<5x5xf32>
    %cst_51 = arith.constant dense<0.000000e+00> : vector<5x8xf32>
    %117 = tpu.matmul %116, %104, %cst_51 {dimension_numbers = #tpu.dot_dimension_numbers<[1], [0], [0], [1], [0, 0, 1, 1], [], []>} : vector<5x5xf32>, vector<5x8xf32>, vector<5x8xf32> -> vector<5x8xf32>
    %118 = vector.extract_strided_slice %43 {offsets = [24, 0], sizes = [8, 32], strides = [1, 1]} : vector<32x32xf32> to vector<8x32xf32>
    %cst_52 = arith.constant dense<0.000000e+00> : vector<5x32xf32>
    %119 = tpu.matmul %117, %118, %cst_52 {dimension_numbers = #tpu.dot_dimension_numbers<[1], [0], [0], [1], [0, 0, 1, 1], [], []>} : vector<5x8xf32>, vector<8x32xf32>, vector<5x32xf32> -> vector<5x32xf32>
    %120 = arith.addf %101, %119 : vector<5x32xf32>
    %121 = arith.addf %7, %120 : vector<5x32xf32>
    %c0_53 = arith.constant 0 : index
    %c0_54 = arith.constant 0 : index
    %c0_55 = arith.constant 0 : index
    %122 = vector.load %arg9[%c0_53, %c0_54, %c0_55] : memref<2x1x32xf32, #tpu.memory_space<vmem>>, vector<1x1x32xf32>
    %123 = vector.shape_cast %122 : vector<1x1x32xf32> to vector<1x32xf32>
    %124 = vector.broadcast %123 : vector<1x32xf32> to vector<5x32xf32>
    %125 = arith.addf %121, %124 : vector<5x32xf32>
    %c0_56 = arith.constant 0 : index
    %c0_57 = arith.constant 0 : index
    %c0_58 = arith.constant 0 : index
    %126 = vector.load %arg10[%c0_56, %c0_57, %c0_58] : memref<2x1x32xf32, #tpu.memory_space<vmem>>, vector<1x1x32xf32>
    %127 = vector.shape_cast %126 : vector<1x1x32xf32> to vector<1x32xf32>
    %c0_59 = arith.constant 0 : index
    %c0_60 = arith.constant 0 : index
    %c0_61 = arith.constant 0 : index
    %128 = vector.load %arg11[%c0_59, %c0_60, %c0_61] : memref<2x1x32xf32, #tpu.memory_space<vmem>>, vector<1x1x32xf32>
    %129 = vector.shape_cast %128 : vector<1x1x32xf32> to vector<1x32xf32>
    %cst_62 = arith.constant dense<0.000000e+00> : vector<5xf32>
    %130 = vector.multi_reduction <add>, %125, %cst_62 [1] : vector<5x32xf32> to vector<5xf32>
    %131 = vector.shape_cast %130 : vector<5xf32> to vector<5x1xf32>
    %cst_63 = arith.constant 3.200000e+01 : f32
    %132 = vector.broadcast %cst_63 : f32 to vector<5x1xf32>
    %133 = arith.divf %131, %132 : vector<5x1xf32>
    %134 = vector.broadcast %133 : vector<5x1xf32> to vector<5x32xf32>
    %135 = arith.subf %125, %134 : vector<5x32xf32>
    %136 = arith.mulf %135, %135 : vector<5x32xf32>
    %cst_64 = arith.constant dense<0.000000e+00> : vector<5xf32>
    %137 = vector.multi_reduction <add>, %136, %cst_64 [1] : vector<5x32xf32> to vector<5xf32>
    %138 = vector.shape_cast %137 : vector<5xf32> to vector<5x1xf32>
    %cst_65 = arith.constant 3.200000e+01 : f32
    %139 = vector.broadcast %cst_65 : f32 to vector<5x1xf32>
    %140 = arith.divf %138, %139 : vector<5x1xf32>
    %141 = vector.broadcast %133 : vector<5x1xf32> to vector<5x32xf32>
    %142 = arith.subf %125, %141 : vector<5x32xf32>
    %cst_66 = arith.constant 9.99999974E-6 : f32
    %143 = vector.broadcast %cst_66 : f32 to vector<5x1xf32>
    %144 = arith.addf %140, %143 : vector<5x1xf32>
    %145 = math.rsqrt %144 : vector<5x1xf32>
    %146 = vector.broadcast %145 : vector<5x1xf32> to vector<5x32xf32>
    %147 = arith.mulf %142, %146 : vector<5x32xf32>
    %148 = vector.broadcast %127 : vector<1x32xf32> to vector<5x32xf32>
    %149 = arith.mulf %147, %148 : vector<5x32xf32>
    %150 = vector.broadcast %129 : vector<1x32xf32> to vector<5x32xf32>
    %151 = arith.addf %149, %150 : vector<5x32xf32>
    %c0_67 = arith.constant 0 : index
    %c0_68 = arith.constant 0 : index
    %c0_69 = arith.constant 0 : index
    %152 = vector.load %arg12[%c0_67, %c0_68, %c0_69] : memref<2x32x128xbf16, #tpu.memory_space<vmem>>, vector<1x32x128xbf16>
    %153 = vector.shape_cast %152 : vector<1x32x128xbf16> to vector<32x128xbf16>
    %154 = arith.truncf %151 : vector<5x32xf32> to vector<5x32xbf16>
    %cst_70 = arith.constant dense<0.000000e+00> : vector<5x128xf32>
    %155 = tpu.matmul %154, %153, %cst_70 {dimension_numbers = #tpu.dot_dimension_numbers<[1], [0], [0], [1], [0, 0, 1, 1], [], []>} : vector<5x32xbf16>, vector<32x128xbf16>, vector<5x128xf32> -> vector<5x128xf32>
    %c0_71 = arith.constant 0 : index
    %c0_72 = arith.constant 0 : index
    %c0_73 = arith.constant 0 : index
    %156 = vector.load %arg13[%c0_71, %c0_72, %c0_73] : memref<2x1x128xf32, #tpu.memory_space<vmem>>, vector<1x1x128xf32>
    %157 = vector.shape_cast %156 : vector<1x1x128xf32> to vector<1x128xf32>
    %158 = vector.broadcast %157 : vector<1x128xf32> to vector<5x128xf32>
    %159 = arith.addf %155, %158 : vector<5x128xf32>
    %160 = arith.mulf %159, %159 : vector<5x128xf32>
    %161 = arith.mulf %159, %160 : vector<5x128xf32>
    %cst_74 = arith.constant 4.471500e-02 : f32
    %162 = vector.broadcast %cst_74 : f32 to vector<5x128xf32>
    %163 = arith.mulf %162, %161 : vector<5x128xf32>
    %164 = arith.addf %159, %163 : vector<5x128xf32>
    %cst_75 = arith.constant 0.797884583 : f32
    %165 = vector.broadcast %cst_75 : f32 to vector<5x128xf32>
    %166 = arith.mulf %165, %164 : vector<5x128xf32>
    %167 = math.tanh %166 : vector<5x128xf32>
    %cst_76 = arith.constant 1.000000e+00 : f32
    %168 = vector.broadcast %cst_76 : f32 to vector<5x128xf32>
    %169 = arith.addf %168, %167 : vector<5x128xf32>
    %cst_77 = arith.constant 5.000000e-01 : f32
    %170 = vector.broadcast %cst_77 : f32 to vector<5x128xf32>
    %171 = arith.mulf %170, %169 : vector<5x128xf32>
    %172 = arith.mulf %159, %171 : vector<5x128xf32>
    %c0_78 = arith.constant 0 : index
    %c0_79 = arith.constant 0 : index
    %c0_80 = arith.constant 0 : index
    %173 = vector.load %arg14[%c0_78, %c0_79, %c0_80] : memref<2x128x32xbf16, #tpu.memory_space<vmem>>, vector<1x128x32xbf16>
    %174 = vector.shape_cast %173 : vector<1x128x32xbf16> to vector<128x32xbf16>
    %175 = arith.truncf %172 : vector<5x128xf32> to vector<5x128xbf16>
    %cst_81 = arith.constant dense<0.000000e+00> : vector<5x32xf32>
    %176 = tpu.matmul %175, %174, %cst_81 {dimension_numbers = #tpu.dot_dimension_numbers<[1], [0], [0], [1], [0, 0, 1, 1], [], []>} : vector<5x128xbf16>, vector<128x32xbf16>, vector<5x32xf32> -> vector<5x32xf32>
    %c0_82 = arith.constant 0 : index
    %c0_83 = arith.constant 0 : index
    %c0_84 = arith.constant 0 : index
    %177 = vector.load %arg15[%c0_82, %c0_83, %c0_84] : memref<2x1x32xf32, #tpu.memory_space<vmem>>, vector<1x1x32xf32>
    %178 = vector.shape_cast %177 : vector<1x1x32xf32> to vector<1x32xf32>
    %179 = vector.broadcast %178 : vector<1x32xf32> to vector<5x32xf32>
    %180 = arith.addf %176, %179 : vector<5x32xf32>
    %181 = arith.addf %125, %180 : vector<5x32xf32>
    %c1 = arith.constant 1 : index
    %c0_85 = arith.constant 0 : index
    %c0_86 = arith.constant 0 : index
    %182 = vector.load %arg4[%c1, %c0_85, %c0_86] : memref<2x1x32xf32, #tpu.memory_space<vmem>>, vector<1x1x32xf32>
    %183 = vector.shape_cast %182 : vector<1x1x32xf32> to vector<1x32xf32>
    %c1_87 = arith.constant 1 : index
    %c0_88 = arith.constant 0 : index
    %c0_89 = arith.constant 0 : index
    %184 = vector.load %arg5[%c1_87, %c0_88, %c0_89] : memref<2x1x32xf32, #tpu.memory_space<vmem>>, vector<1x1x32xf32>
    %185 = vector.shape_cast %184 : vector<1x1x32xf32> to vector<1x32xf32>
    %cst_90 = arith.constant dense<0.000000e+00> : vector<5xf32>
    %186 = vector.multi_reduction <add>, %181, %cst_90 [1] : vector<5x32xf32> to vector<5xf32>
    %187 = vector.shape_cast %186 : vector<5xf32> to vector<5x1xf32>
    %cst_91 = arith.constant 3.200000e+01 : f32
    %188 = vector.broadcast %cst_91 : f32 to vector<5x1xf32>
    %189 = arith.divf %187, %188 : vector<5x1xf32>
    %190 = vector.broadcast %189 : vector<5x1xf32> to vector<5x32xf32>
    %191 = arith.subf %181, %190 : vector<5x32xf32>
    %192 = arith.mulf %191, %191 : vector<5x32xf32>
    %cst_92 = arith.constant dense<0.000000e+00> : vector<5xf32>
    %193 = vector.multi_reduction <add>, %192, %cst_92 [1] : vector<5x32xf32> to vector<5xf32>
    %194 = vector.shape_cast %193 : vector<5xf32> to vector<5x1xf32>
    %cst_93 = arith.constant 3.200000e+01 : f32
    %195 = vector.broadcast %cst_93 : f32 to vector<5x1xf32>
    %196 = arith.divf %194, %195 : vector<5x1xf32>
    %197 = vector.broadcast %189 : vector<5x1xf32> to vector<5x32xf32>
    %198 = arith.subf %181, %197 : vector<5x32xf32>
    %cst_94 = arith.constant 9.99999974E-6 : f32
    %199 = vector.broadcast %cst_94 : f32 to vector<5x1xf32>
    %200 = arith.addf %196, %199 : vector<5x1xf32>
    %201 = math.rsqrt %200 : vector<5x1xf32>
    %202 = vector.broadcast %201 : vector<5x1xf32> to vector<5x32xf32>
    %203 = arith.mulf %198, %202 : vector<5x32xf32>
    %204 = vector.broadcast %183 : vector<1x32xf32> to vector<5x32xf32>
    %205 = arith.mulf %203, %204 : vector<5x32xf32>
    %206 = vector.broadcast %185 : vector<1x32xf32> to vector<5x32xf32>
    %207 = arith.addf %205, %206 : vector<5x32xf32>
    %c1_95 = arith.constant 1 : index
    %c0_96 = arith.constant 0 : index
    %c0_97 = arith.constant 0 : index
    %208 = vector.load %arg6[%c1_95, %c0_96, %c0_97] : memref<2x32x96xbf16, #tpu.memory_space<vmem>>, vector<1x32x96xbf16>
    %209 = vector.shape_cast %208 : vector<1x32x96xbf16> to vector<32x96xbf16>
    %210 = arith.truncf %207 : vector<5x32xf32> to vector<5x32xbf16>
    %cst_98 = arith.constant dense<0.000000e+00> : vector<5x96xf32>
    %211 = tpu.matmul %210, %209, %cst_98 {dimension_numbers = #tpu.dot_dimension_numbers<[1], [0], [0], [1], [0, 0, 1, 1], [], []>} : vector<5x32xbf16>, vector<32x96xbf16>, vector<5x96xf32> -> vector<5x96xf32>
    %c1_99 = arith.constant 1 : index
    %c0_100 = arith.constant 0 : index
    %c0_101 = arith.constant 0 : index
    %212 = vector.load %arg7[%c1_99, %c0_100, %c0_101] : memref<2x1x96xf32, #tpu.memory_space<vmem>>, vector<1x1x96xf32>
    %213 = vector.shape_cast %212 : vector<1x1x96xf32> to vector<1x96xf32>
    %214 = vector.broadcast %213 : vector<1x96xf32> to vector<5x96xf32>
    %215 = arith.addf %211, %214 : vector<5x96xf32>
    %c1_102 = arith.constant 1 : index
    %c0_103 = arith.constant 0 : index
    %c0_104 = arith.constant 0 : index
    %216 = vector.load %arg8[%c1_102, %c0_103, %c0_104] : memref<2x32x32xf32, #tpu.memory_space<vmem>>, vector<1x32x32xf32>
    %217 = vector.shape_cast %216 : vector<1x32x32xf32> to vector<32x32xf32>
    %cst_105 = arith.constant 0.000000e+00 : f32
    %218 = vector.broadcast %cst_105 : f32 to vector<5x32xf32>
    %219 = vector.extract_strided_slice %215 {offsets = [0, 0], sizes = [5, 8], strides = [1, 1]} : vector<5x96xf32> to vector<5x8xf32>
    %220 = vector.extract_strided_slice %215 {offsets = [0, 32], sizes = [5, 8], strides = [1, 1]} : vector<5x96xf32> to vector<5x8xf32>
    %221 = vector.extract_strided_slice %215 {offsets = [0, 64], sizes = [5, 8], strides = [1, 1]} : vector<5x96xf32> to vector<5x8xf32>
    %cst_106 = arith.constant dense<0.000000e+00> : vector<5x5xf32>
    %222 = tpu.matmul %219, %220, %cst_106 {dimension_numbers = #tpu.dot_dimension_numbers<[1], [1], [0], [0], [0, 0, 1, 0], [], []>} : vector<5x8xf32>, vector<5x8xf32>, vector<5x5xf32> -> vector<5x5xf32>
    %cst_107 = arith.constant 0.353553385 : f32
    %223 = vector.broadcast %cst_107 : f32 to vector<5x5xf32>
    %224 = arith.mulf %222, %223 : vector<5x5xf32>
    %cst_108 = arith.constant dense<0xFF800000> : vector<5xf32>
    %225 = vector.multi_reduction <maximumf>, %224, %cst_108 [1] : vector<5x5xf32> to vector<5xf32>
    %226 = vector.shape_cast %225 : vector<5xf32> to vector<5x1xf32>
    %227 = vector.broadcast %226 : vector<5x1xf32> to vector<5x5xf32>
    %228 = arith.subf %224, %227 : vector<5x5xf32>
    %229 = math.exp %228 : vector<5x5xf32>
    %cst_109 = arith.constant dense<0.000000e+00> : vector<5xf32>
    %230 = vector.multi_reduction <add>, %229, %cst_109 [1] : vector<5x5xf32> to vector<5xf32>
    %231 = vector.shape_cast %230 : vector<5xf32> to vector<5x1xf32>
    %232 = vector.broadcast %231 : vector<5x1xf32> to vector<5x5xf32>
    %233 = arith.divf %229, %232 : vector<5x5xf32>
    %cst_110 = arith.constant dense<0.000000e+00> : vector<5x8xf32>
    %234 = tpu.matmul %233, %221, %cst_110 {dimension_numbers = #tpu.dot_dimension_numbers<[1], [0], [0], [1], [0, 0, 1, 1], [], []>} : vector<5x5xf32>, vector<5x8xf32>, vector<5x8xf32> -> vector<5x8xf32>
    %235 = vector.extract_strided_slice %217 {offsets = [0, 0], sizes = [8, 32], strides = [1, 1]} : vector<32x32xf32> to vector<8x32xf32>
    %cst_111 = arith.constant dense<0.000000e+00> : vector<5x32xf32>
    %236 = tpu.matmul %234, %235, %cst_111 {dimension_numbers = #tpu.dot_dimension_numbers<[1], [0], [0], [1], [0, 0, 1, 1], [], []>} : vector<5x8xf32>, vector<8x32xf32>, vector<5x32xf32> -> vector<5x32xf32>
    %237 = arith.addf %218, %236 : vector<5x32xf32>
    %238 = vector.extract_strided_slice %215 {offsets = [0, 8], sizes = [5, 8], strides = [1, 1]} : vector<5x96xf32> to vector<5x8xf32>
    %239 = vector.extract_strided_slice %215 {offsets = [0, 40], sizes = [5, 8], strides = [1, 1]} : vector<5x96xf32> to vector<5x8xf32>
    %240 = vector.extract_strided_slice %215 {offsets = [0, 72], sizes = [5, 8], strides = [1, 1]} : vector<5x96xf32> to vector<5x8xf32>
    %cst_112 = arith.constant dense<0.000000e+00> : vector<5x5xf32>
    %241 = tpu.matmul %238, %239, %cst_112 {dimension_numbers = #tpu.dot_dimension_numbers<[1], [1], [0], [0], [0, 0, 1, 0], [], []>} : vector<5x8xf32>, vector<5x8xf32>, vector<5x5xf32> -> vector<5x5xf32>
    %cst_113 = arith.constant 0.353553385 : f32
    %242 = vector.broadcast %cst_113 : f32 to vector<5x5xf32>
    %243 = arith.mulf %241, %242 : vector<5x5xf32>
    %cst_114 = arith.constant dense<0xFF800000> : vector<5xf32>
    %244 = vector.multi_reduction <maximumf>, %243, %cst_114 [1] : vector<5x5xf32> to vector<5xf32>
    %245 = vector.shape_cast %244 : vector<5xf32> to vector<5x1xf32>
    %246 = vector.broadcast %245 : vector<5x1xf32> to vector<5x5xf32>
    %247 = arith.subf %243, %246 : vector<5x5xf32>
    %248 = math.exp %247 : vector<5x5xf32>
    %cst_115 = arith.constant dense<0.000000e+00> : vector<5xf32>
    %249 = vector.multi_reduction <add>, %248, %cst_115 [1] : vector<5x5xf32> to vector<5xf32>
    %250 = vector.shape_cast %249 : vector<5xf32> to vector<5x1xf32>
    %251 = vector.broadcast %250 : vector<5x1xf32> to vector<5x5xf32>
    %252 = arith.divf %248, %251 : vector<5x5xf32>
    %cst_116 = arith.constant dense<0.000000e+00> : vector<5x8xf32>
    %253 = tpu.matmul %252, %240, %cst_116 {dimension_numbers = #tpu.dot_dimension_numbers<[1], [0], [0], [1], [0, 0, 1, 1], [], []>} : vector<5x5xf32>, vector<5x8xf32>, vector<5x8xf32> -> vector<5x8xf32>
    %254 = vector.extract_strided_slice %217 {offsets = [8, 0], sizes = [8, 32], strides = [1, 1]} : vector<32x32xf32> to vector<8x32xf32>
    %cst_117 = arith.constant dense<0.000000e+00> : vector<5x32xf32>
    %255 = tpu.matmul %253, %254, %cst_117 {dimension_numbers = #tpu.dot_dimension_numbers<[1], [0], [0], [1], [0, 0, 1, 1], [], []>} : vector<5x8xf32>, vector<8x32xf32>, vector<5x32xf32> -> vector<5x32xf32>
    %256 = arith.addf %237, %255 : vector<5x32xf32>
    %257 = vector.extract_strided_slice %215 {offsets = [0, 16], sizes = [5, 8], strides = [1, 1]} : vector<5x96xf32> to vector<5x8xf32>
    %258 = vector.extract_strided_slice %215 {offsets = [0, 48], sizes = [5, 8], strides = [1, 1]} : vector<5x96xf32> to vector<5x8xf32>
    %259 = vector.extract_strided_slice %215 {offsets = [0, 80], sizes = [5, 8], strides = [1, 1]} : vector<5x96xf32> to vector<5x8xf32>
    %cst_118 = arith.constant dense<0.000000e+00> : vector<5x5xf32>
    %260 = tpu.matmul %257, %258, %cst_118 {dimension_numbers = #tpu.dot_dimension_numbers<[1], [1], [0], [0], [0, 0, 1, 0], [], []>} : vector<5x8xf32>, vector<5x8xf32>, vector<5x5xf32> -> vector<5x5xf32>
    %cst_119 = arith.constant 0.353553385 : f32
    %261 = vector.broadcast %cst_119 : f32 to vector<5x5xf32>
    %262 = arith.mulf %260, %261 : vector<5x5xf32>
    %cst_120 = arith.constant dense<0xFF800000> : vector<5xf32>
    %263 = vector.multi_reduction <maximumf>, %262, %cst_120 [1] : vector<5x5xf32> to vector<5xf32>
    %264 = vector.shape_cast %263 : vector<5xf32> to vector<5x1xf32>
    %265 = vector.broadcast %264 : vector<5x1xf32> to vector<5x5xf32>
    %266 = arith.subf %262, %265 : vector<5x5xf32>
    %267 = math.exp %266 : vector<5x5xf32>
    %cst_121 = arith.constant dense<0.000000e+00> : vector<5xf32>
    %268 = vector.multi_reduction <add>, %267, %cst_121 [1] : vector<5x5xf32> to vector<5xf32>
    %269 = vector.shape_cast %268 : vector<5xf32> to vector<5x1xf32>
    %270 = vector.broadcast %269 : vector<5x1xf32> to vector<5x5xf32>
    %271 = arith.divf %267, %270 : vector<5x5xf32>
    %cst_122 = arith.constant dense<0.000000e+00> : vector<5x8xf32>
    %272 = tpu.matmul %271, %259, %cst_122 {dimension_numbers = #tpu.dot_dimension_numbers<[1], [0], [0], [1], [0, 0, 1, 1], [], []>} : vector<5x5xf32>, vector<5x8xf32>, vector<5x8xf32> -> vector<5x8xf32>
    %273 = vector.extract_strided_slice %217 {offsets = [16, 0], sizes = [8, 32], strides = [1, 1]} : vector<32x32xf32> to vector<8x32xf32>
    %cst_123 = arith.constant dense<0.000000e+00> : vector<5x32xf32>
    %274 = tpu.matmul %272, %273, %cst_123 {dimension_numbers = #tpu.dot_dimension_numbers<[1], [0], [0], [1], [0, 0, 1, 1], [], []>} : vector<5x8xf32>, vector<8x32xf32>, vector<5x32xf32> -> vector<5x32xf32>
    %275 = arith.addf %256, %274 : vector<5x32xf32>
    %276 = vector.extract_strided_slice %215 {offsets = [0, 24], sizes = [5, 8], strides = [1, 1]} : vector<5x96xf32> to vector<5x8xf32>
    %277 = vector.extract_strided_slice %215 {offsets = [0, 56], sizes = [5, 8], strides = [1, 1]} : vector<5x96xf32> to vector<5x8xf32>
    %278 = vector.extract_strided_slice %215 {offsets = [0, 88], sizes = [5, 8], strides = [1, 1]} : vector<5x96xf32> to vector<5x8xf32>
    %cst_124 = arith.constant dense<0.000000e+00> : vector<5x5xf32>
    %279 = tpu.matmul %276, %277, %cst_124 {dimension_numbers = #tpu.dot_dimension_numbers<[1], [1], [0], [0], [0, 0, 1, 0], [], []>} : vector<5x8xf32>, vector<5x8xf32>, vector<5x5xf32> -> vector<5x5xf32>
    %cst_125 = arith.constant 0.353553385 : f32
    %280 = vector.broadcast %cst_125 : f32 to vector<5x5xf32>
    %281 = arith.mulf %279, %280 : vector<5x5xf32>
    %cst_126 = arith.constant dense<0xFF800000> : vector<5xf32>
    %282 = vector.multi_reduction <maximumf>, %281, %cst_126 [1] : vector<5x5xf32> to vector<5xf32>
    %283 = vector.shape_cast %282 : vector<5xf32> to vector<5x1xf32>
    %284 = vector.broadcast %283 : vector<5x1xf32> to vector<5x5xf32>
    %285 = arith.subf %281, %284 : vector<5x5xf32>
    %286 = math.exp %285 : vector<5x5xf32>
    %cst_127 = arith.constant dense<0.000000e+00> : vector<5xf32>
    %287 = vector.multi_reduction <add>, %286, %cst_127 [1] : vector<5x5xf32> to vector<5xf32>
    %288 = vector.shape_cast %287 : vector<5xf32> to vector<5x1xf32>
    %289 = vector.broadcast %288 : vector<5x1xf32> to vector<5x5xf32>
    %290 = arith.divf %286, %289 : vector<5x5xf32>
    %cst_128 = arith.constant dense<0.000000e+00> : vector<5x8xf32>
    %291 = tpu.matmul %290, %278, %cst_128 {dimension_numbers = #tpu.dot_dimension_numbers<[1], [0], [0], [1], [0, 0, 1, 1], [], []>} : vector<5x5xf32>, vector<5x8xf32>, vector<5x8xf32> -> vector<5x8xf32>
    %292 = vector.extract_strided_slice %217 {offsets = [24, 0], sizes = [8, 32], strides = [1, 1]} : vector<32x32xf32> to vector<8x32xf32>
    %cst_129 = arith.constant dense<0.000000e+00> : vector<5x32xf32>
    %293 = tpu.matmul %291, %292, %cst_129 {dimension_numbers = #tpu.dot_dimension_numbers<[1], [0], [0], [1], [0, 0, 1, 1], [], []>} : vector<5x8xf32>, vector<8x32xf32>, vector<5x32xf32> -> vector<5x32xf32>
    %294 = arith.addf %275, %293 : vector<5x32xf32>
    %295 = arith.addf %181, %294 : vector<5x32xf32>
    %c1_130 = arith.constant 1 : index
    %c0_131 = arith.constant 0 : index
    %c0_132 = arith.constant 0 : index
    %296 = vector.load %arg9[%c1_130, %c0_131, %c0_132] : memref<2x1x32xf32, #tpu.memory_space<vmem>>, vector<1x1x32xf32>
    %297 = vector.shape_cast %296 : vector<1x1x32xf32> to vector<1x32xf32>
    %298 = vector.broadcast %297 : vector<1x32xf32> to vector<5x32xf32>
    %299 = arith.addf %295, %298 : vector<5x32xf32>
    %c1_133 = arith.constant 1 : index
    %c0_134 = arith.constant 0 : index
    %c0_135 = arith.constant 0 : index
    %300 = vector.load %arg10[%c1_133, %c0_134, %c0_135] : memref<2x1x32xf32, #tpu.memory_space<vmem>>, vector<1x1x32xf32>
    %301 = vector.shape_cast %300 : vector<1x1x32xf32> to vector<1x32xf32>
    %c1_136 = arith.constant 1 : index
    %c0_137 = arith.constant 0 : index
    %c0_138 = arith.constant 0 : index
    %302 = vector.load %arg11[%c1_136, %c0_137, %c0_138] : memref<2x1x32xf32, #tpu.memory_space<vmem>>, vector<1x1x32xf32>
    %303 = vector.shape_cast %302 : vector<1x1x32xf32> to vector<1x32xf32>
    %cst_139 = arith.constant dense<0.000000e+00> : vector<5xf32>
    %304 = vector.multi_reduction <add>, %299, %cst_139 [1] : vector<5x32xf32> to vector<5xf32>
    %305 = vector.shape_cast %304 : vector<5xf32> to vector<5x1xf32>
    %cst_140 = arith.constant 3.200000e+01 : f32
    %306 = vector.broadcast %cst_140 : f32 to vector<5x1xf32>
    %307 = arith.divf %305, %306 : vector<5x1xf32>
    %308 = vector.broadcast %307 : vector<5x1xf32> to vector<5x32xf32>
    %309 = arith.subf %299, %308 : vector<5x32xf32>
    %310 = arith.mulf %309, %309 : vector<5x32xf32>
    %cst_141 = arith.constant dense<0.000000e+00> : vector<5xf32>
    %311 = vector.multi_reduction <add>, %310, %cst_141 [1] : vector<5x32xf32> to vector<5xf32>
    %312 = vector.shape_cast %311 : vector<5xf32> to vector<5x1xf32>
    %cst_142 = arith.constant 3.200000e+01 : f32
    %313 = vector.broadcast %cst_142 : f32 to vector<5x1xf32>
    %314 = arith.divf %312, %313 : vector<5x1xf32>
    %315 = vector.broadcast %307 : vector<5x1xf32> to vector<5x32xf32>
    %316 = arith.subf %299, %315 : vector<5x32xf32>
    %cst_143 = arith.constant 9.99999974E-6 : f32
    %317 = vector.broadcast %cst_143 : f32 to vector<5x1xf32>
    %318 = arith.addf %314, %317 : vector<5x1xf32>
    %319 = math.rsqrt %318 : vector<5x1xf32>
    %320 = vector.broadcast %319 : vector<5x1xf32> to vector<5x32xf32>
    %321 = arith.mulf %316, %320 : vector<5x32xf32>
    %322 = vector.broadcast %301 : vector<1x32xf32> to vector<5x32xf32>
    %323 = arith.mulf %321, %322 : vector<5x32xf32>
    %324 = vector.broadcast %303 : vector<1x32xf32> to vector<5x32xf32>
    %325 = arith.addf %323, %324 : vector<5x32xf32>
    %c1_144 = arith.constant 1 : index
    %c0_145 = arith.constant 0 : index
    %c0_146 = arith.constant 0 : index
    %326 = vector.load %arg12[%c1_144, %c0_145, %c0_146] : memref<2x32x128xbf16, #tpu.memory_space<vmem>>, vector<1x32x128xbf16>
    %327 = vector.shape_cast %326 : vector<1x32x128xbf16> to vector<32x128xbf16>
    %328 = arith.truncf %325 : vector<5x32xf32> to vector<5x32xbf16>
    %cst_147 = arith.constant dense<0.000000e+00> : vector<5x128xf32>
    %329 = tpu.matmul %328, %327, %cst_147 {dimension_numbers = #tpu.dot_dimension_numbers<[1], [0], [0], [1], [0, 0, 1, 1], [], []>} : vector<5x32xbf16>, vector<32x128xbf16>, vector<5x128xf32> -> vector<5x128xf32>
    %c1_148 = arith.constant 1 : index
    %c0_149 = arith.constant 0 : index
    %c0_150 = arith.constant 0 : index
    %330 = vector.load %arg13[%c1_148, %c0_149, %c0_150] : memref<2x1x128xf32, #tpu.memory_space<vmem>>, vector<1x1x128xf32>
    %331 = vector.shape_cast %330 : vector<1x1x128xf32> to vector<1x128xf32>
    %332 = vector.broadcast %331 : vector<1x128xf32> to vector<5x128xf32>
    %333 = arith.addf %329, %332 : vector<5x128xf32>
    %334 = arith.mulf %333, %333 : vector<5x128xf32>
    %335 = arith.mulf %333, %334 : vector<5x128xf32>
    %cst_151 = arith.constant 4.471500e-02 : f32
    %336 = vector.broadcast %cst_151 : f32 to vector<5x128xf32>
    %337 = arith.mulf %336, %335 : vector<5x128xf32>
    %338 = arith.addf %333, %337 : vector<5x128xf32>
    %cst_152 = arith.constant 0.797884583 : f32
    %339 = vector.broadcast %cst_152 : f32 to vector<5x128xf32>
    %340 = arith.mulf %339, %338 : vector<5x128xf32>
    %341 = math.tanh %340 : vector<5x128xf32>
    %cst_153 = arith.constant 1.000000e+00 : f32
    %342 = vector.broadcast %cst_153 : f32 to vector<5x128xf32>
    %343 = arith.addf %342, %341 : vector<5x128xf32>
    %cst_154 = arith.constant 5.000000e-01 : f32
    %344 = vector.broadcast %cst_154 : f32 to vector<5x128xf32>
    %345 = arith.mulf %344, %343 : vector<5x128xf32>
    %346 = arith.mulf %333, %345 : vector<5x128xf32>
    %c1_155 = arith.constant 1 : index
    %c0_156 = arith.constant 0 : index
    %c0_157 = arith.constant 0 : index
    %347 = vector.load %arg14[%c1_155, %c0_156, %c0_157] : memref<2x128x32xbf16, #tpu.memory_space<vmem>>, vector<1x128x32xbf16>
    %348 = vector.shape_cast %347 : vector<1x128x32xbf16> to vector<128x32xbf16>
    %349 = arith.truncf %346 : vector<5x128xf32> to vector<5x128xbf16>
    %cst_158 = arith.constant dense<0.000000e+00> : vector<5x32xf32>
    %350 = tpu.matmul %349, %348, %cst_158 {dimension_numbers = #tpu.dot_dimension_numbers<[1], [0], [0], [1], [0, 0, 1, 1], [], []>} : vector<5x128xbf16>, vector<128x32xbf16>, vector<5x32xf32> -> vector<5x32xf32>
    %c1_159 = arith.constant 1 : index
    %c0_160 = arith.constant 0 : index
    %c0_161 = arith.constant 0 : index
    %351 = vector.load %arg15[%c1_159, %c0_160, %c0_161] : memref<2x1x32xf32, #tpu.memory_space<vmem>>, vector<1x1x32xf32>
    %352 = vector.shape_cast %351 : vector<1x1x32xf32> to vector<1x32xf32>
    %353 = vector.broadcast %352 : vector<1x32xf32> to vector<5x32xf32>
    %354 = arith.addf %350, %353 : vector<5x32xf32>
    %355 = arith.addf %299, %354 : vector<5x32xf32>
    %356 = vector.extract_strided_slice %355 {offsets = [0, 0], sizes = [1, 32], strides = [1, 1]} : vector<5x32xf32> to vector<1x32xf32>
    %c0_162 = arith.constant 0 : index
    %c0_163 = arith.constant 0 : index
    %357 = vector.load %arg16[%c0_162, %c0_163] : memref<1x32xf32, #tpu.memory_space<vmem>>, vector<1x32xf32>
    %c0_164 = arith.constant 0 : index
    %c0_165 = arith.constant 0 : index
    %358 = vector.load %arg17[%c0_164, %c0_165] : memref<1x32xf32, #tpu.memory_space<vmem>>, vector<1x32xf32>
    %cst_166 = arith.constant dense<0.000000e+00> : vector<1xf32>
    %359 = vector.multi_reduction <add>, %356, %cst_166 [1] : vector<1x32xf32> to vector<1xf32>
    %360 = vector.shape_cast %359 : vector<1xf32> to vector<1x1xf32>
    %cst_167 = arith.constant 3.200000e+01 : f32
    %361 = vector.broadcast %cst_167 : f32 to vector<1x1xf32>
    %362 = arith.divf %360, %361 : vector<1x1xf32>
    %363 = vector.broadcast %362 : vector<1x1xf32> to vector<1x32xf32>
    %364 = arith.subf %356, %363 : vector<1x32xf32>
    %365 = arith.mulf %364, %364 : vector<1x32xf32>
    %cst_168 = arith.constant dense<0.000000e+00> : vector<1xf32>
    %366 = vector.multi_reduction <add>, %365, %cst_168 [1] : vector<1x32xf32> to vector<1xf32>
    %367 = vector.shape_cast %366 : vector<1xf32> to vector<1x1xf32>
    %cst_169 = arith.constant 3.200000e+01 : f32
    %368 = vector.broadcast %cst_169 : f32 to vector<1x1xf32>
    %369 = arith.divf %367, %368 : vector<1x1xf32>
    %370 = vector.broadcast %362 : vector<1x1xf32> to vector<1x32xf32>
    %371 = arith.subf %356, %370 : vector<1x32xf32>
    %cst_170 = arith.constant 9.99999974E-6 : f32
    %372 = vector.broadcast %cst_170 : f32 to vector<1x1xf32>
    %373 = arith.addf %369, %372 : vector<1x1xf32>
    %374 = math.rsqrt %373 : vector<1x1xf32>
    %375 = vector.broadcast %374 : vector<1x1xf32> to vector<1x32xf32>
    %376 = arith.mulf %371, %375 : vector<1x32xf32>
    %377 = arith.mulf %376, %357 : vector<1x32xf32>
    %378 = arith.addf %377, %358 : vector<1x32xf32>
    %c0_171 = arith.constant 0 : index
    %c0_172 = arith.constant 0 : index
    %379 = vector.load %arg18[%c0_171, %c0_172] : memref<1x32xf32, #tpu.memory_space<vmem>>, vector<1x32xf32>
    %c0_173 = arith.constant 0 : index
    %c0_174 = arith.constant 0 : index
    %380 = vector.load %arg19[%c0_173, %c0_174] : memref<1x32xf32, #tpu.memory_space<vmem>>, vector<1x32xf32>
    %cst_175 = arith.constant dense<0.000000e+00> : vector<1xf32>
    %381 = vector.multi_reduction <add>, %378, %cst_175 [1] : vector<1x32xf32> to vector<1xf32>
    %382 = vector.shape_cast %381 : vector<1xf32> to vector<1x1xf32>
    %cst_176 = arith.constant 3.200000e+01 : f32
    %383 = vector.broadcast %cst_176 : f32 to vector<1x1xf32>
    %384 = arith.divf %382, %383 : vector<1x1xf32>
    %385 = vector.broadcast %384 : vector<1x1xf32> to vector<1x32xf32>
    %386 = arith.subf %378, %385 : vector<1x32xf32>
    %387 = arith.mulf %386, %386 : vector<1x32xf32>
    %cst_177 = arith.constant dense<0.000000e+00> : vector<1xf32>
    %388 = vector.multi_reduction <add>, %387, %cst_177 [1] : vector<1x32xf32> to vector<1xf32>
    %389 = vector.shape_cast %388 : vector<1xf32> to vector<1x1xf32>
    %cst_178 = arith.constant 3.200000e+01 : f32
    %390 = vector.broadcast %cst_178 : f32 to vector<1x1xf32>
    %391 = arith.divf %389, %390 : vector<1x1xf32>
    %392 = vector.broadcast %384 : vector<1x1xf32> to vector<1x32xf32>
    %393 = arith.subf %378, %392 : vector<1x32xf32>
    %cst_179 = arith.constant 9.99999974E-6 : f32
    %394 = vector.broadcast %cst_179 : f32 to vector<1x1xf32>
    %395 = arith.addf %391, %394 : vector<1x1xf32>
    %396 = math.rsqrt %395 : vector<1x1xf32>
    %397 = vector.broadcast %396 : vector<1x1xf32> to vector<1x32xf32>
    %398 = arith.mulf %393, %397 : vector<1x32xf32>
    %399 = arith.mulf %398, %379 : vector<1x32xf32>
    %400 = arith.addf %399, %380 : vector<1x32xf32>
    %c0_180 = arith.constant 0 : index
    %c0_181 = arith.constant 0 : index
    %401 = vector.load %arg20[%c0_180, %c0_181] : memref<32x5xf32, #tpu.memory_space<vmem>>, vector<32x5xf32>
    %cst_182 = arith.constant dense<0.000000e+00> : vector<1x5xf32>
    %402 = tpu.matmul %400, %401, %cst_182 {dimension_numbers = #tpu.dot_dimension_numbers<[1], [0], [0], [1], [0, 0, 1, 1], [], []>} : vector<1x32xf32>, vector<32x5xf32>, vector<1x5xf32> -> vector<1x5xf32>
    %c0_183 = arith.constant 0 : index
    %c0_184 = arith.constant 0 : index
    %403 = vector.load %arg21[%c0_183, %c0_184] : memref<1x5xf32, #tpu.memory_space<vmem>>, vector<1x5xf32>
    %404 = arith.addf %402, %403 : vector<1x5xf32>
    %405 = arith.negf %404 : vector<1x5xf32>
    %406 = math.exp %405 : vector<1x5xf32>
    %cst_185 = arith.constant 1.000000e+00 : f32
    %407 = vector.broadcast %cst_185 : f32 to vector<1x5xf32>
    %408 = arith.addf %407, %406 : vector<1x5xf32>
    %409 = arith.divf %407, %408 : vector<1x5xf32>
    %c0_186 = arith.constant 0 : index
    %c0_187 = arith.constant 0 : index
    %c0_188 = arith.constant 0 : index
    %410 = vector.load %arg22[%c0_186, %c0_187, %c0_188] : memref<1x1x5xf32, #tpu.memory_space<vmem>>, vector<1x1x5xf32>
    %411 = vector.shape_cast %410 : vector<1x1x5xf32> to vector<1x5xf32>
    %412 = vector.shape_cast %409 : vector<1x5xf32> to vector<1x1x5xf32>
    tpu.vector_store %arg22[%c0_186, %c0_187, %c0_188], %412 {strides = array<i32>} : memref<1x1x5xf32, #tpu.memory_space<vmem>>, vector<1x1x5xf32>,
    return
  }
  func.func @transform_0(%arg0: i32) -> (i32, i32, i32) {
    %c0_i32 = arith.constant 0 : i32
    %c0_i32_0 = arith.constant 0 : i32
    %c0_i32_1 = arith.constant 0 : i32
    return %arg0, %c0_i32, %c0_i32_0 : i32, i32, i32
  }
  func.func @transform_1(%arg0: i32) -> (i32, i32, i32) {
    %c0_i32 = arith.constant 0 : i32
    %c0_i32_0 = arith.constant 0 : i32
    %c0_i32_1 = arith.constant 0 : i32
    %c0_i32_2 = arith.constant 0 : i32
    return %c0_i32, %c0_i32_0, %c0_i32_1 : i32, i32, i32
  }
  func.func @transform_2(%arg0: i32) -> (i32, i32) {
    %c0_i32 = arith.constant 0 : i32
    %c0_i32_0 = arith.constant 0 : i32
    %c0_i32_1 = arith.constant 0 : i32
    return %c0_i32, %c0_i32_0 : i32, i32
  }
  func.func @transform_3(%arg0: i32) -> (i32, i32, i32) {
    %c0_i32 = arith.constant 0 : i32
    %c0_i32_0 = arith.constant 0 : i32
    %c0_i32_1 = arith.constant 0 : i32
    %c0_i32_2 = arith.constant 0 : i32
    return %c0_i32, %c0_i32_0, %c0_i32_1 : i32, i32, i32
  }
  func.func @transform_4(%arg0: i32) -> (i32, i32, i32) {
    %c0_i32 = arith.constant 0 : i32
    %c0_i32_0 = arith.constant 0 : i32
    %c0_i32_1 = arith.constant 0 : i32
    %c0_i32_2 = arith.constant 0 : i32
    return %c0_i32, %c0_i32_0, %c0_i32_1 : i32, i32, i32
  }
  func.func @transform_5(%arg0: i32) -> (i32, i32, i32) {
    %c0_i32 = arith.constant 0 : i32
    %c0_i32_0 = arith.constant 0 : i32
    %c0_i32_1 = arith.constant 0 : i32
    %c0_i32_2 = arith.constant 0 : i32
    return %c0_i32, %c0_i32_0, %c0_i32_1 : i32, i32, i32
  }
  func.func @transform_6(%arg0: i32) -> (i32, i32, i32) {
    %c0_i32 = arith.constant 0 : i32
    %c0_i32_0 = arith.constant 0 : i32
    %c0_i32_1 = arith.constant 0 : i32
    %c0_i32_2 = arith.constant 0 : i32
    return %c0_i32, %c0_i32_0, %c0_i32_1 : i32, i32, i32
  }
  func.func @transform_7(%arg0: i32) -> (i32, i32, i32) {
    %c0_i32 = arith.constant 0 : i32
    %c0_i32_0 = arith.constant 0 : i32
    %c0_i32_1 = arith.constant 0 : i32
    %c0_i32_2 = arith.constant 0 : i32
    return %c0_i32, %c0_i32_0, %c0_i32_1 : i32, i32, i32
  }
  func.func @transform_8(%arg0: i32) -> (i32, i32, i32) {
    %c0_i32 = arith.constant 0 : i32
    %c0_i32_0 = arith.constant 0 : i32
    %c0_i32_1 = arith.constant 0 : i32
    %c0_i32_2 = arith.constant 0 : i32
    return %c0_i32, %c0_i32_0, %c0_i32_1 : i32, i32, i32
  }
  func.func @transform_9(%arg0: i32) -> (i32, i32, i32) {
    %c0_i32 = arith.constant 0 : i32
    %c0_i32_0 = arith.constant 0 : i32
    %c0_i32_1 = arith.constant 0 : i32
    %c0_i32_2 = arith.constant 0 : i32
    return %c0_i32, %c0_i32_0, %c0_i32_1 : i32, i32, i32
  }
  func.func @transform_10(%arg0: i32) -> (i32, i32, i32) {
    %c0_i32 = arith.constant 0 : i32
    %c0_i32_0 = arith.constant 0 : i32
    %c0_i32_1 = arith.constant 0 : i32
    %c0_i32_2 = arith.constant 0 : i32
    return %c0_i32, %c0_i32_0, %c0_i32_1 : i32, i32, i32
  }
  func.func @transform_11(%arg0: i32) -> (i32, i32, i32) {
    %c0_i32 = arith.constant 0 : i32
    %c0_i32_0 = arith.constant 0 : i32
    %c0_i32_1 = arith.constant 0 : i32
    %c0_i32_2 = arith.constant 0 : i32
    return %c0_i32, %c0_i32_0, %c0_i32_1 : i32, i32, i32
  }
  func.func @transform_12(%arg0: i32) -> (i32, i32, i32) {
    %c0_i32 = arith.constant 0 : i32
    %c0_i32_0 = arith.constant 0 : i32
    %c0_i32_1 = arith.constant 0 : i32
    %c0_i32_2 = arith.constant 0 : i32
    return %c0_i32, %c0_i32_0, %c0_i32_1 : i32, i32, i32
  }
  func.func @transform_13(%arg0: i32) -> (i32, i32, i32) {
    %c0_i32 = arith.constant 0 : i32
    %c0_i32_0 = arith.constant 0 : i32
    %c0_i32_1 = arith.constant 0 : i32
    %c0_i32_2 = arith.constant 0 : i32
    return %c0_i32, %c0_i32_0, %c0_i32_1 : i32, i32, i32
  }
  func.func @transform_14(%arg0: i32) -> (i32, i32, i32) {
    %c0_i32 = arith.constant 0 : i32
    %c0_i32_0 = arith.constant 0 : i32
    %c0_i32_1 = arith.constant 0 : i32
    %c0_i32_2 = arith.constant 0 : i32
    return %c0_i32, %c0_i32_0, %c0_i32_1 : i32, i32, i32
  }
  func.func @transform_15(%arg0: i32) -> (i32, i32) {
    %c0_i32 = arith.constant 0 : i32
    %c0_i32_0 = arith.constant 0 : i32
    %c0_i32_1 = arith.constant 0 : i32
    return %c0_i32, %c0_i32_0 : i32, i32
  }
  func.func @transform_16(%arg0: i32) -> (i32, i32) {
    %c0_i32 = arith.constant 0 : i32
    %c0_i32_0 = arith.constant 0 : i32
    %c0_i32_1 = arith.constant 0 : i32
    return %c0_i32, %c0_i32_0 : i32, i32
  }
  func.func @transform_17(%arg0: i32) -> (i32, i32) {
    %c0_i32 = arith.constant 0 : i32
    %c0_i32_0 = arith.constant 0 : i32
    %c0_i32_1 = arith.constant 0 : i32
    return %c0_i32, %c0_i32_0 : i32, i32
  }
  func.func @transform_18(%arg0: i32) -> (i32, i32) {
    %c0_i32 = arith.constant 0 : i32
    %c0_i32_0 = arith.constant 0 : i32
    %c0_i32_1 = arith.constant 0 : i32
    return %c0_i32, %c0_i32_0 : i32, i32
  }
  func.func @transform_19(%arg0: i32) -> (i32, i32) {
    %c0_i32 = arith.constant 0 : i32
    %c0_i32_0 = arith.constant 0 : i32
    %c0_i32_1 = arith.constant 0 : i32
    return %c0_i32, %c0_i32_0 : i32, i32
  }
  func.func @transform_20(%arg0: i32) -> (i32, i32) {
    %c0_i32 = arith.constant 0 : i32
    %c0_i32_0 = arith.constant 0 : i32
    %c0_i32_1 = arith.constant 0 : i32
    return %c0_i32, %c0_i32_0 : i32, i32
  }
  func.func @transform_21(%arg0: i32) -> (i32, i32, i32) {
    %c0_i32 = arith.constant 0 : i32
    %c0_i32_0 = arith.constant 0 : i32
    %c0_i32_1 = arith.constant 0 : i32
    return %arg0, %c0_i32, %c0_i32_0 : i32, i32, i32
  }
}

</mosaic_0001>

<bundles_post_ra>
// kernel: forward.1
= control target key start
LH: loop header
LB: loop body
LE: loop exit
PB: predicated region body
PF: predicated region fallthrough
CT: control target
= control target key end

     0   :  { %s5538_s0 = inlined_call_operand.vmem [shape: f32[2,5,768], index: 0, kind: input, shape index: {}]   ;;  %s5539_s1 = inlined_call_operand.vmem [shape: f32[1,5,32], index: 1, kind: input, shape index: {}]   ;;  %s5540_s2 = inlined_call_operand.vmem [shape: bf16[768,32], index: 2, kind: input, shape index: {}]   ;;  %s5541_s3 = inlined_call_operand.vmem [shape: f32[2,1,32], index: 3, kind: input, shape index: {}]   ;;  %s5542_s4 = inlined_call_operand.vmem [shape: f32[2,1,32], index: 4, kind: input, shape index: {}]   ;;  %s5543_s5 = inlined_call_operand.vmem [shape: bf16[2,32,96], index: 5, kind: input, shape index: {}]   ;;  %s5544_s6 = inlined_call_operand.vmem [shape: f32[2,1,96], index: 6, kind: input, shape index: {}]   ;;  %s5545_s7 = inlined_call_operand.vmem [shape: f32[2,32,32], index: 7, kind: input, shape index: {}]   ;;  %s5546_s8 = inlined_call_operand.vmem [shape: f32[2,1,32], index: 8, kind: input, shape index: {}]   ;;  %s5547_s9 = inlined_call_operand.vmem [shape: f32[2,1,32], index: 9, kind: input, shape index: {}]   ;;  %s5548_s10 = inlined_call_operand.vmem [shape: f32[2,1,32], index: 10, kind: input, shape index: {}]   ;;  %s5549_s11 = inlined_call_operand.vmem [shape: bf16[2,32,128], index: 11, kind: input, shape index: {}]   ;;  %s5550_s12 = inlined_call_operand.vmem [shape: f32[2,1,128], index: 12, kind: input, shape index: {}]   ;;  %s5551_s13 = inlined_call_operand.vmem [shape: bf16[2,128,32], index: 13, kind: input, shape index: {}]   ;;  %s5552_s14 = inlined_call_operand.vmem [shape: f32[2,1,32], index: 14, kind: input, shape index: {}]   ;;  %s5553_s15 = inlined_call_operand.vmem [shape: f32[1,32], index: 15, kind: input, shape index: {}]   ;;  %s5554_s16 = inlined_call_operand.vmem [shape: f32[1,32], index: 16, kind: input, shape index: {}]   ;;  %s5555_s17 = inlined_call_operand.vmem [shape: f32[1,32], index: 17, kind: input, shape index: {}]   ;;  %s5556_s18 = inlined_call_operand.vmem [shape: f32[1,32], index: 18, kind: input, shape index: {}]   ;;  %s5557_s19 = inlined_call_operand.vmem [shape: f32[32,5], index: 19, kind: input, shape index: {}]   ;;  %s5558_s20 = inlined_call_operand.vmem [shape: f32[1,5], index: 20, kind: input, shape index: {}]   ;;  %s5559_s21 = inlined_call_operand.hbm [shape: f32[2,1,5], index: 21, kind: output, shape index: {}]  }
   0x1   :  { %5582 = sst [smem:[#allocation11_spill]] %s5538_s0 }
   0x2   :  { %5583 = sst [smem:[#allocation12_spill]] %s5539_s1 }
   0x3   :  { %5584 = sst [smem:[#allocation13_spill]] %s5540_s2 }
   0x4   :  { %5585 = sst [smem:[#allocation14_spill]] %s5541_s3 }
   0x5   :  { %5586 = sst [smem:[#allocation15_spill]] %s5542_s4 }
   0x6   :  { %5587 = sst [smem:[#allocation16_spill]] %s5543_s5 }
   0x7   :  { %5588 = sst [smem:[#allocation17_spill]] %s5544_s6 }
   0x8   :  { %5589 = sst [smem:[#allocation18_spill]] %s5545_s7 }
   0x9   :  { %5590 = sst [smem:[#allocation19_spill]] %s5559_s21 }
   0xa   :  { %26 = vsyncpa [#allocation3], 0 }
   0xb   :  { %28 = vsyncpa [#allocation3 + $0x1], 0  ;;  %s4859_s2 = smov 0   ;;  %s4861_s25 = smov 0  }
   0xc   :  { %s4863_s26 = smov 0   ;;  %s4865_s27 = smov 0  }
   0xd LB: > { %5591 = sst [smem:[#allocation5_spill]] %s4720_s2  ;;  %s4880_s3 = sadd.s32 4294967295, %s4732_s27   ;;  %s4732_s27 = sphi %s4865_s27, %s5623_s27   ;;  %s4728_s26 = sphi %s4863_s26, %s5628_s26   ;;  %s4724_s25 = sphi %s4861_s25, %s5627_s25   ;;  %s4720_s2 = sphi %s4859_s2, %s5626_s2  }
   0xe   : > { %5592 = sst [smem:[#allocation6_spill]] %s4728_s26  ;;  %s3956_s28 = sadd.s32 4294967294, %s4732_s27  }
   0xf   : > { %5593 = sst [smem:[#allocation7_spill]] %s4732_s27  ;;  %s4884_s29 = sadd.s32 1, %s4732_s27  }
  0x10   : > { %5594 = sst [smem:[#allocation8_spill]] %s4884_s29  ;;  %s487_s0 = sadd.s32 1, %s4728_s26 }
  0x11   : > { %s484_s4 = ssub.s32 %s4732_s27, %s4884_s29  ;;  %p497_p0 = scmp.ne.s32.totalorder %s4728_s26, %s4724_s25 }
  0x12   : > { %p485_p1 = scmp.eq.s32.totalorder %s484_s4, 0  ;;  %p498_p2 = scmp.eq.s32.totalorder %s4880_s3, 1 }
  0x13   : > { %p503_p3 = scmp.ne.s32.totalorder %s4724_s25, %s4720_s2  ;;  %p504_p4 = scmp.eq.s32.totalorder %s3956_s28, 1 }
  0x14   : > { %s4895_s30 = scalar_select %p485_p1, %s4728_s26, %s487_s0  }
  0x15   : > { %p4897_p5 = por %p498_p2, %p497_p0  ;;  %p4901_p6 = por %p504_p4, %p503_p3 }
  0x16   : > { %5595 = sst [smem:[#allocation9_spill]] %s4895_s30  ;;  %p3959_p7 = scmp.ge.s32.totalorder %s4732_s27, 1 }
  0x17   : > { %s5597_s22 = scalar_select %p4901_p6, 1, 0 }
  0x18   : > { %p590_p8 = scmp.lt.s32.totalorder %s4732_s27, 3 }
  0x19   : > { %5598 = sst [smem:[#allocation10_spill]] %s5597_s22 }
  0x1a   : > { %p591_p9 = pnand %p3959_p7, %p590_p8 }
  0x1b   : > { %s5599_s24 = sld [smem:[#allocation13_spill]] (!%p591_p9)  ;;  %p649_p10 = scmp.lt.s32.totalorder (!%p591_p9), %s4880_s3, 1  ;;  %vm1174_vm0 = vcmask (!%p591_p9), 258048   ;;  %vm4735_vm1 = vmmov (!%p591_p9), 0   ;;  %vm1227_vm2 = vcmask (!%p591_p9), 261120   ;;  %vm1278_vm3 = vcmask (!%p591_p9), 64512  }
  0x1c   : > { %594 = sbr.rel (%p591_p9) target bundleno = 9048 (0x2358), region = 104  ;;  %s5600_s21 = sld [smem:[#allocation11_spill]] (!%p591_p9)  ;;  %vm1372_vm4 = vcmask (!%p591_p9), 1044480   ;;  %vm1354_vm5 = vcmask (!%p591_p9), 36864   ;;  %vm1368_vm6 = vcmask (!%p591_p9), 39936   ;;  %vm3769_vm7 = vcmask (!%p591_p9), 253952  }
  0x1d   : > { %s5601_s2 = sld [smem:[#allocation12_spill]] (!%p591_p9)  ;;  %s5603_s26 = sld [smem:[#allocation14_spill]] (!%p591_p9)  ;;  %vm3886_vm8 = vcmask (!%p591_p9), 32768  }
  0x1e   : > { %s5607_s6 = sld [smem:[#allocation17_spill]] (!%p591_p9)  ;;  %s4736_s28 = smov (!%p591_p9), 64  }
  0x1f   : > { %s5580_s30 = smov (!%p591_p9), 96   ;;  %s5578_s0 = smov (!%p591_p9), 88  }
  0x20   : > { %s5574_s29 = smov (!%p591_p9), 112   ;;  %s5571_s23 = smov (!%p591_p9), 104  }
  0x21   : > { %v4546_v0 = vld [vmem:[%s5599_s24 + $0x40] sm:$0xff] (!%p591_p9)   ;;  %v4550_v4 = vld [vmem:[%s5599_s24 + $0x48] sm:$0xff] (!%p591_p9)   ;;  %v4554_v8 = vld [vmem:[%s5599_s24 + $0x50] sm:$0xff] (!%p591_p9)   ;;  %s5608_s7 = sld [smem:[#allocation18_spill]] (!%p591_p9) }
  0x22   : > { %v4547_v1 = vld [vmem:[%s5599_s24] sm:$0xff] (!%p591_p9)   ;;  %4134 = vmatprep.subr.bf16.mxu0 (!%p591_p9), %v4546_v0  ;;  %v4551_v5 = vld [vmem:[%s5599_s24 + $0x8] sm:$0xff] (!%p591_p9)   ;;  %v4555_v9 = vld [vmem:[%s5599_s24 + $0x10] sm:$0xff] (!%p591_p9)  }
  0x23   : > { %v4548_v2 = vld [vmem:[%s5599_s24 + $0xc0] sm:$0xff]   ;;  %4135 = vmatpush3.bf16.msra.mxu0 %v4547_v1  ;;  %v4552_v6 = vld [vmem:[%s5599_s24 + $0xc8] sm:$0xff]   ;;  %v4556_v10 = vld [vmem:[%s5599_s24 + $0xd0] sm:$0xff]   ;;  %s650_s4 = scalar_select %p649_p10, %s4880_s3, 1 }
  0x24   : > { %v4549_v3 = vld [vmem:[%s5599_s24 + $0x80] sm:$0xff]   ;;  %4156 = vmatprep.subr.bf16.mxu1 %v4548_v2  ;;  %4136 = vmatprep.subr.bf16.mxu0 %v4550_v4  ;;  %v4553_v7 = vld [vmem:[%s5599_s24 + $0x88] sm:$0xff]   ;;  %v4557_v11 = vld [vmem:[%s5599_s24 + $0x90] sm:$0xff]  }
  0x25   : > { %4157 = vmatpush3.bf16.msra.mxu1 %v4549_v3  ;;  %v4558_v12 = vld [vmem:[%s5599_s24 + $0x58] sm:$0xff]   ;;  %v4562_v16 = vld [vmem:[%s5599_s24 + $0x60] sm:$0xff]   ;;  %v4566_v20 = vld [vmem:[%s5599_s24 + $0x68] sm:$0xff]   ;;  %s4492_s1 = smul.u32 48, %s650_s4  ;;  %s5602_s4 = sld [smem:[#allocation16_spill]] }
  0x26   : > { %4158 = vmatprep.subr.bf16.mxu1 %v4552_v6  ;;  %v4559_v13 = vld [vmem:[%s5599_s24 + $0x18] sm:$0xff]   ;;  %v4563_v17 = vld [vmem:[%s5599_s24 + $0x20] sm:$0xff]   ;;  %v4567_v21 = vld [vmem:[%s5599_s24 + $0x28] sm:$0xff]  }
  0x27   : > { %4137 = vmatpush3.bf16.msra.mxu0 %v4551_v5  ;;  %v4560_v14 = vld [vmem:[%s5599_s24 + $0xd8] sm:$0xff]   ;;  %v4564_v18 = vld [vmem:[%s5599_s24 + $0xe0] sm:$0xff]   ;;  %v4568_v22 = vld [vmem:[%s5599_s24 + $0xe8] sm:$0xff]   ;;  %s4999_s27 = scalar_lea.vmem %s5600_s21, %s4492_s1  ;;  %s5604_s21 = smov %s5603_s26 }
  0x28   : > { %4138 = vmatprep.subr.bf16.mxu0 %v4554_v8  ;;  %v4561_v15 = vld [vmem:[%s5599_s24 + $0x98] sm:$0xff]   ;;  %v4565_v19 = vld [vmem:[%s5599_s24 + $0xa0] sm:$0xff]   ;;  %v4569_v23 = vld [vmem:[%s5599_s24 + $0xa8] sm:$0xff]   ;;  %s5579_s1 = smov 120  }
  0x29   : > { %4159 = vmatpush3.bf16.msra.mxu1 %v4553_v7  ;;  %v4570_v24 = vld [vmem:[%s5599_s24 + $0x70] sm:$0xff]   ;;  %v4574_v28 = vld [vmem:[%s5599_s24 + $0x78] sm:$0xff]   ;;  %v656_v31 = vld [vmem:[%s4999_s27 + $0x8] sm:$0x1f] }
  0x2a   : > { %4160 = vmatprep.subr.bf16.mxu1 %v4556_v10  ;;  %v4571_v25 = vld [vmem:[%s5599_s24 + $0x30] sm:$0xff]   ;;  %v4575_v29 = vld [vmem:[%s5599_s24 + $0x38] sm:$0xff]   ;;  %v758_v32 = vpack.c.bf16 %v656_v31, %v656_v31  ;;  %v655_v34 = vld [vmem:[%s4999_s27] sm:$0x1f] }
  0x2b   : > { %4139 = vmatpush3.bf16.msra.mxu0 %v4555_v9  ;;  %v4572_v26 = vld [vmem:[%s5599_s24 + $0xf0] sm:$0xff]   ;;  %v4576_v30 = vld [vmem:[%s5599_s24 + $0xf8] sm:$0xff]   ;;  %v757_v35 = vpack.c.bf16 %v655_v34, %v655_v34  ;;  %v4578_v36 = vld [vmem:[%s5599_s24 + $0x140] sm:$0xff]  }
  0x2c   : > { %4140 = vmatprep.subr.bf16.mxu0 %v4558_v12  ;;  %v4573_v27 = vld [vmem:[%s5599_s24 + $0xb0] sm:$0xff]   ;;  %v4577_v33 = vld [vmem:[%s5599_s24 + $0xb8] sm:$0xff]   ;;  %1084 = vmatprep.mubr.bf16.mxu0 %v758_v32  ;;  %v4579_v39 = vld [vmem:[%s5599_s24 + $0x100] sm:$0xff]  }
  0x2d   : > { %4161 = vmatpush3.bf16.msra.mxu1 %v4557_v11  ;;  %v658_v37 = vld [vmem:[%s4999_s27 + $0x18] sm:$0x1f]  ;;  %v657_v40 = vld [vmem:[%s4999_s27 + $0x10] sm:$0x1f]  ;;  %v4580_v42 = vld [vmem:[%s5599_s24 + $0x148] sm:$0xff]  }
  0x2e   : > { %4162 = vmatprep.subr.bf16.mxu1 %v4560_v14  ;;  %v760_v38 = vpack.c.bf16 %v658_v37, %v658_v37  ;;  %v759_v41 = vpack.c.bf16 %v657_v40, %v657_v40  ;;  %v4581_v43 = vld [vmem:[%s5599_s24 + $0x108] sm:$0xff]   ;;  %v4582_v44 = vld [vmem:[%s5599_s24 + $0x150] sm:$0xff]   ;;  %v4584_v46 = vld [vmem:[%s5599_s24 + $0x158] sm:$0xff]  }
  0x2f   : > { %4141 = vmatpush3.bf16.msra.mxu0 %v4559_v13  ;;  %v4583_v45 = vld [vmem:[%s5599_s24 + $0x110] sm:$0xff]   ;;  %v4585_v47 = vld [vmem:[%s5599_s24 + $0x118] sm:$0xff]   ;;  %v4586_v48 = vld [vmem:[%s5599_s24 + $0x160] sm:$0xff]  }
  0x30   : > { %4142 = vmatprep.subr.bf16.mxu0 %v4562_v16  ;;  %1124 = vmatprep.mubr.bf16.mxu1 %v760_v38  ;;  %v4587_v49 = vld [vmem:[%s5599_s24 + $0x120] sm:$0xff]   ;;  %v4588_v50 = vld [vmem:[%s5599_s24 + $0x168] sm:$0xff]   ;;  %v4590_v54 = vld [vmem:[%s5599_s24 + $0x170] sm:$0xff]  }
  0x31   : > { %4163 = vmatpush3.bf16.msra.mxu1 %v4561_v15  ;;  %v660_v51 = vld [vmem:[%s4999_s27 + $0x28] sm:$0x1f]  ;;  %v4591_v55 = vld [vmem:[%s5599_s24 + $0x130] sm:$0xff]   ;;  %v4592_v56 = vld [vmem:[%s5599_s24 + $0x178] sm:$0xff]  }
  0x32   : > { %4164 = vmatprep.subr.bf16.mxu1 %v4564_v18  ;;  %v4589_v52 = vld [vmem:[%s5599_s24 + $0x128] sm:$0xff]   ;;  %v762_v53 = vpack.c.bf16 %v660_v51, %v660_v51  ;;  %v4593_v57 = vld [vmem:[%s5599_s24 + $0x138] sm:$0xff]   ;;  %v659_v58 = vld [vmem:[%s4999_s27 + $0x20] sm:$0x1f]  ;;  %s5572_s27 = smov 48  }
  0x33   : > { %4143 = vmatpush3.bf16.msra.mxu0 %v4563_v17  ;;  %v761_v59 = vpack.c.bf16 %v659_v58, %v659_v58  ;;  %v763_v61 = vld [vmem:[%s5601_s2] sm:$0x1f]  ;;  %s5605_s2 = sld [smem:[#allocation15_spill]] }
  0x34   : > { %4144 = vmatprep.subr.bf16.mxu0 %v4566_v20  ;;  %v4011_v34 = vld [vmem:[%s5607_s6] ss:$0 sm:$0xff] }
  0x35   : > { %4165 = vmatpush3.bf16.msra.mxu1 %v4565_v19 }
  0x36   : > { %4166 = vmatprep.subr.bf16.mxu1 %v4568_v22  ;;  %v4734_v22 = vmov 0.0  }
  0x37   : > { %4145 = vmatpush3.bf16.msra.mxu0 %v4567_v21  ;;  %v4594_v21 = vld [vmem:[%s5602_s4] sm:$0xff]  }
  0x38   : > { %4146 = vmatprep.subr.bf16.mxu0 %v4570_v24 }
  0x39   : > { %4167 = vmatpush3.bf16.msra.mxu1 %v4569_v23  ;;  %v4595_v23 = vld [vmem:[%s5602_s4 + $0x8] sm:$0xff]   ;;  %s5606_s22 = smov %s5605_s2 }
  0x3a   : > { %4168 = vmatprep.subr.bf16.mxu1 %v4572_v26 }
  0x3b   : > { %4147 = vmatpush3.bf16.msra.mxu0 %v4571_v25 }
  0x3c   : > { %4148 = vmatprep.subr.bf16.mxu0 %v4574_v28  ;;  %v4009_v28 = vld [vmem:[%s5603_s26] ss:$0 sm:$0xff]  ;;  %s5573_s26 = smov 80  }
  0x3d   : > { %4169 = vmatpush3.bf16.msra.mxu1 %v4573_v27 }
  0x3e   : > { %4170 = vmatprep.subr.bf16.mxu1 %v4576_v30  ;;  %v4010_v30 = vld [vmem:[%s5605_s2] ss:$0 sm:$0xff]  ;;  %s5575_s2 = smov 56  }
  0x3f   : > { %4149 = vmatpush3.bf16.msra.mxu0 %v4575_v29 }
  0x40   : > { %4178 = vmatprep.subr.bf16.mxu0 %v4578_v36 }
  0x41   : > { %4171 = vmatpush3.bf16.msra.mxu1 %v4577_v33 }
  0x42   : > { %1085 = vmatmul.mubr.bf16.vlgmr.msra.gmra.mrb[0].mxu0 %v757_v35  ;;  %4291 = vmatprep.subr.mxu1 %v4734_v22 }
  0x43   : > { %4179 = vmatpush3.bf16.msra.mxu0 %v4579_v39  ;;  %1164 = vmatprep.mubr.bf16.mxu0 %v762_v53 }
  0x44   : > { %1125 = vmatmul.mubr.bf16.vlgmr.msra.gmra.mrb[0].mxu1 %v759_v41  ;;  %4180 = vmatprep.subr.bf16.mxu0 %v4580_v42 }
  0x45   : > { %4293 = vmatprep.mubr.msk.f32.mxu1 %vm4735_vm1, %v4734_v22 }
  0x47   : > { %4181 = vmatpush3.bf16.msra.mxu0 %v4581_v43 }
  0x48   : > { %4182 = vmatprep.subr.bf16.mxu0 %v4582_v44 }
  0x4b   : > { %4183 = vmatpush3.bf16.msra.mxu0 %v4583_v45 }
  0x4c   : > { %4184 = vmatprep.subr.bf16.mxu0 %v4584_v46 }
  0x4f   : > { %4185 = vmatpush3.bf16.msra.mxu0 %v4585_v47 }
  0x50   : > { %4186 = vmatprep.subr.bf16.mxu0 %v4586_v48 }
  0x53   : > { %4187 = vmatpush3.bf16.msra.mxu0 %v4587_v49 }
  0x54   : > { %4188 = vmatprep.subr.bf16.mxu0 %v4588_v50 }
  0x57   : > { %4189 = vmatpush3.bf16.msra.mxu0 %v4589_v52 }
  0x58   : > { %4190 = vmatprep.subr.bf16.mxu0 %v4590_v54 }
  0x5b   : > { %4191 = vmatpush3.bf16.msra.mxu0 %v4591_v55 }
  0x5c   : > { %4192 = vmatprep.subr.bf16.mxu0 %v4592_v56 }
  0x5f   : > { %4193 = vmatpush3.bf16.msra.mxu0 %v4593_v57 }
  0x60   : > { %4283 = vmatprep.subr.bf16.mxu0 %v4734_v22 }
  0x62   : > { %1165 = vmatmul.mubr.bf16.vlgmr.msra.gmra.mrb[4].mxu0 %v761_v59 }
  0x63   : > { %4287 = vmatprep.mubr.msk.bf16.mxu0 %vm4735_vm1, %v4734_v22  ;;  %4284 = vmatpush3.bf16.msra.mxu0 %v4594_v21  ;;  %v1271_v21 = vld [vmem:[%s5608_s7] sm:$0xff] }
  0x64   : > { %4285 = vmatprep.subr.bf16.mxu0 %v4734_v22 }
  0x67   : > { %4286 = vmatpush3.bf16.msra.mxu0 %v4595_v23 }
  0x68   : > { %4321 = vmatprep.subr.mxu0 %v4734_v22 }
 0x115   : > { %v4150_v60 = vpop.f32.mrb[0].mxu0 }
 0x116   : > { %v4151_v62 = vpop.f32.mrb[1].mxu0 }
 0x117   : > { %v4152_v63 = vadd.f32 %v4151_v62, %v4150_v60  ;;  %v4153_v0 = vpop.f32.mrb[2].mxu0  ;;  %v4172_v1 = vpop.f32.mrb[0].mxu1 }
 0x118   : > { %v4154_v2 = vpop.f32.mrb[3].mxu0  ;;  %v4173_v4 = vpop.f32.mrb[1].mxu1 }
 0x119   : > { %v1087_v3 = vadd.f32 %v4152_v63, %v763_v61  ;;  %v4174_v5 = vadd.f32 %v4173_v4, %v4172_v1  ;;  %v4175_v6 = vpop.f32.mrb[2].mxu1 }
 0x11a   : > { %v4176_v7 = vpop.f32.mrb[3].mxu1 }
 0x11b   : > { %v1127_v8 = vadd.f32 %v4174_v5, %v1087_v3 }
 0x135   : > { %v4194_v9 = vpop.f32.mrb[4].mxu0 }
 0x136   : > { %v4195_v10 = vpop.f32.mrb[5].mxu0 }
 0x137   : > { %v4196_v11 = vadd.f32 %v4195_v10, %v4194_v9  ;;  %v4197_v12 = vpop.f32.mrb[6].mxu0 }
 0x138   : > { %v4198_v13 = vpop.f32.mrb[7].mxu0 }
 0x139   : > { %v5067_v14 = vadd.f32 %v4196_v11, %v1127_v8 }
 0x13b   : > { %v1175_v15 = vsel %vm1174_vm0, %v5067_v14, 0.0 }
 0x13c   : > { %1176 = vadd.xlane.f32.xlu0 %v1175_v15 }
 0x1c9   : > { %v1177_v16 = vpop.xlane.xlu0 %1176 }
 0x1ca   : > { %v1179_v17 = vmul.f32 0.03125, %v1177_v16 }
 0x1cc   : > { %v1180_v18 = vsub.f32 %v5067_v14, %v1179_v17 }
 0x1ce   : > { %v1181_v19 = vmul.f32 %v1180_v18, %v1180_v18 }
 0x1d0   : > { %v1182_v20 = vsel %vm1174_vm0, %v1181_v19, 0.0  ;;  %v1272_v19 = vld [vmem:[%s5608_s7 + $0x8] sm:$0xff] }
 0x1d1   : > { %1183 = vadd.xlane.f32.xlu0 %v1182_v20 }
 0x25e   : > { %v1184_v24 = vpop.xlane.xlu0 %1183 }
 0x25f   : > { %v1185_v25 = vmul.f32 0.03125, %v1184_v24 }
 0x261   : > { %v1186_v26 = vadd.f32 1e-05, %v1185_v25 }
 0x263   : > { %4618 = vrsqrt.f32 %v1186_v26 }
 0x26d   : > { %v4619_v27 = vpop.eup %4618 }
 0x26e   : > { %v1188_v29 = vmul.f32 %v4619_v27, %v1180_v18 }
 0x270   : > { %v1195_v31 = vmul.f32 %v4009_v28, %v1188_v29 }
 0x272   : > { %v1202_v32 = vadd.f32 %v4010_v30, %v1195_v31  ;;  %v1273_v30 = vld [vmem:[%s5608_s7 + $0x10] sm:$0xff] }
 0x274   : > { %v1207_v33 = vpack.c.bf16 %v1202_v32, %v1202_v32 }
 0x276   : > { %4288 = vmatmul.mubr.msk.bf16.vlgmr.msra.gmra.mrb[8].mxu0 %vm1227_vm2, %v1207_v33 }
 0x277   : > { %4323 = vmatprep.mubr.msk.f32.mxu0 %vm4735_vm1, %v4734_v22 }
 0x349   : > { %v1265_v35 = vpop.f32.mrb[8].mxu0 }
 0x34a   : > { %v5099_v36 = vadd.f32 %v4011_v34, %v1265_v35  ;;  %v4289_v37 = vpop.f32.mrb[9].mxu0 }
 0x34b   : > { %v1268_v38 = vpop.f32.mrb[10].mxu0 }
 0x34c   : > { %1366 = vrot.lane.b32.xlu0 %v5099_v36, %s4736_s28  ;;  %1276 = vrot.lane.b32.xlu1 %v5099_v36, %s5580_s30  ;;  %v4290_v39 = vpop.f32.mrb[11].mxu0  ;;  %s5611_s30 = smov 88  }
 0x350   : > { %1447 = vrot.lane.b32.xlu0 %v5099_v36, %s5578_s0  ;;  %s5612_s0 = smov 56  }
 0x3be   : > { %v1277_v40 = vpop.permute.xlu1 %1276  ;;  %v1367_v41 = vpop.permute.xlu0 %1366 }
 0x3bf   : > { %4292 = vmatpush3.xpose.msk.msra.mxu1 %vm1278_vm3, %v1277_v40 }
 0x3c0   : > { %4296 = vmatprep.subr.mxu1 %v4734_v22 }
 0x3c2   : > { %4294 = vmatmul.mubr.msk.f32.vlgmr.msra.gmra.mrb[4].mxu1 %vm1278_vm3, %v5099_v36  ;;  %v1448_v52 = vpop.permute.xlu0 %1447 }
 0x3c3   : > { %4297 = vmatpush3.msk.msra.mxu1 %vm1372_vm4, %v1367_v41  ;;  %4298 = vmatprep.mubr.msk.f32.mxu1 %vm4735_vm1, %v4734_v22 }
 0x3c4   : > { %4301 = vmatprep.subr.mxu1 %v4734_v22 }
 0x495   : > { %v1349_v42 = vpop.f32.mrb[4].mxu1 }
 0x496   : > { %v1353_v43 = vmul.f32 0.35355338, %v1349_v42  ;;  %v4295_v44 = vpop.f32.mrb[5].mxu1 }
 0x498   : > { %v1355_v45 = vsel %vm1354_vm5, %v1353_v43, -inf }
 0x499   : > { %1356 = vmax.xlane.f32.xlu1 %v1355_v45 }
 0x4aa   : > { %1760 = vrot.lane.b32.xlu1 %v5099_v36, %s5573_s26 }
 0x526   : > { %v1357_v46 = vpop.xlane.xlu1 %1356 }
 0x527   : > { %v1358_v47 = vsub.f32 %v1353_v43, %v1357_v46 }
 0x529   : > { %v1359_v48 = vmul.f32 1.442695, %v1358_v47 }
 0x52a   : > { %v1761_v49 = vpop.permute.xlu1 %1760 }
 0x52b   : > { %4620 = vpow2.f32 %v1359_v48  ;;  %4322 = vmatpush3.xpose.msk.msra.mxu0 %vm1278_vm3, %v1761_v49 }
 0x52c   : > { %4331 = vmatprep.subr.mxu0 %v4734_v22 }
 0x535   : > { %v4621_v50 = vpop.eup %4620 }
 0x536   : > { %v1361_v51 = vsel %vm1354_vm5, %v4621_v50, 0.0 }
 0x537   : > { %1362 = vadd.xlane.f32.xlu0 %v1361_v51 }
 0x54d   : > { %1445 = vrot.lane.b32.xlu0 %v5099_v36, %s5579_s1  ;;  %s5609_s1 = smov 96  }
 0x551   : > { %1758 = vrot.lane.b32.xlu0 %v5099_v36, %s5574_s29  ;;  %s4131_s29 = sshll.u32 %s4880_s3, 4  ;;  %s4748_s3 = smov [#allocation2]  }
 0x5c4   : > { %v1363_v53 = vpop.xlane.xlu0 %1362 }
 0x5c5   : > { %4622 = vrcp.f32 %v1363_v53 }
 0x5c8   : > { %v1446_v54 = vpop.permute.xlu0 %1445 }
 0x5cc   : > { %v1759_v55 = vpop.permute.xlu0 %1758 }
 0x5cd   : > { %4324 = vmatmul.mubr.msk.f32.vlgmr.msra.gmra.mrb[12].mxu0 %vm1278_vm3, %v1759_v55 }
 0x5ce   : > { %4333 = vmatprep.mubr.msk.f32.mxu0 %vm4735_vm1, %v4734_v22  ;;  %4332 = vmatpush3.msra.mxu0 %v1273_v30 }
 0x5cf   : > { %v4623_v56 = vpop.eup %4622  ;;  %4341 = vmatprep.subr.mxu0 %v4734_v22 }
 0x5d0   : > { %v1365_v57 = vmul.f32 %v4623_v56, %v4621_v50 }
 0x5d2   : > { %4299 = vmatmul.mubr.msk.f32.vlgmr.msra.gmra.mrb[6].mxu1 %vm1368_vm6, %v1365_v57 }
 0x5d3   : > { %4302 = vmatpush3.xpose.msk.msra.mxu1 %vm1278_vm3, %v1448_v52  ;;  %4303 = vmatprep.mubr.msk.f32.mxu1 %vm4735_vm1, %v4734_v22 }
 0x5d4   : > { %4306 = vmatprep.subr.mxu1 %v4734_v22 }
 0x5d6   : > { %4304 = vmatmul.mubr.msk.f32.vlgmr.msra.gmra.mrb[8].mxu1 %vm1278_vm3, %v1446_v54  ;;  %v1274_v54 = vld [vmem:[%s5608_s7 + $0x18] sm:$0xff] }
 0x5d7   : > { %4308 = vmatprep.mubr.msk.f32.mxu1 %vm4735_vm1, %v4734_v22 }
 0x6a0   : > { %v1832_v58 = vpop.f32.mrb[12].mxu0 }
 0x6a1   : > { %v4325_v59 = vpop.f32.mrb[13].mxu0  ;;  %v1836_v7 = vmul.f32 0.35355338, %v1832_v58 }
 0x6a3   : > { %v1837_v9 = vsel %vm1354_vm5, %v1836_v7, -inf }
 0x6a5   : > { %v1441_v60 = vpop.f32.mrb[6].mxu1 }
 0x6a6   : > { %v4300_v61 = vpop.f32.mrb[7].mxu1 }
 0x6a9   : > { %v1519_v62 = vpop.f32.mrb[8].mxu1 }
 0x6aa   : > { %v1523_v63 = vmul.f32 0.35355338, %v1519_v62  ;;  %v4305_v0 = vpop.f32.mrb[9].mxu1 }
 0x6ac   : > { %v1524_v1 = vsel %vm1354_vm5, %v1523_v63, -inf }
 0x6ad   : > { %1525 = vmax.xlane.f32.xlu0 %v1524_v1 }
 0x6c3   : > { %1535 = vrot.lane.b32.xlu0 %v5099_v36, %s5575_s2  ;;  %s5576_s2 = smov 40  }
 0x6c7   : > { %1848 = vrot.lane.b32.xlu0 %v5099_v36, %s5572_s27  ;;  %s5614_s27 = smov 80  }
 0x6cb   : > { %1999 = vrot.lane.b32.xlu0 %v5099_v36, %s5571_s23  ;;  %s5577_s23 = smov 72  }
 0x73a   : > { %v1526_v2 = vpop.xlane.xlu0 %1525 }
 0x73b   : > { %v1527_v3 = vsub.f32 %v1523_v63, %v1526_v2 }
 0x73d   : > { %v1528_v4 = vmul.f32 1.442695, %v1527_v3 }
 0x73e   : > { %v1536_v5 = vpop.permute.xlu0 %1535 }
 0x73f   : > { %4624 = vpow2.f32 %v1528_v4  ;;  %4307 = vmatpush3.msk.msra.mxu1 %vm1372_vm4, %v1536_v5  ;;  %v4596_v5 = vld [vmem:[%s5549_s11] sm:$0xff]  }
 0x740   : > { %4311 = vmatprep.subr.mxu1 %v4734_v22 }
 0x742   : > { %v1849_v26 = vpop.permute.xlu0 %1848 }
 0x746   : > { %v2000_v29 = vpop.permute.xlu0 %1999 }
 0x749   : > { %v4625_v6 = vpop.eup %4624 }
 0x74a   : > { %v1530_v8 = vsel %vm1354_vm5, %v4625_v6, 0.0 }
 0x74b   : > { %1531 = vadd.xlane.f32.xlu1 %v1530_v8 }
 0x74f   : > { %1838 = vmax.xlane.f32.xlu1 %v1837_v9 }
 0x7d8   : > { %v1532_v10 = vpop.xlane.xlu1 %1531 }
 0x7d9   : > { %4626 = vrcp.f32 %v1532_v10  ;;  %v4036_v10 = vld [vmem:[%s5547_s9] ss:$0 sm:$0xff] }
 0x7dc   : > { %v1839_v11 = vpop.xlane.xlu1 %1838 }
 0x7dd   : > { %v1840_v12 = vsub.f32 %v1836_v7, %v1839_v11 }
 0x7df   : > { %v1841_v13 = vmul.f32 1.442695, %v1840_v12  ;;  %v4037_v12 = vld [vmem:[%s5548_s10] ss:$0 sm:$0xff] }
 0x7e1   : > { %4628 = vpow2.f32 %v1841_v13 }
 0x7e3   : > { %v4627_v15 = vpop.eup %4626 }
 0x7e4   : > { %v1534_v16 = vmul.f32 %v4627_v15, %v4625_v6 }
 0x7e6   : > { %4309 = vmatmul.mubr.msk.f32.vlgmr.msra.gmra.mrb[10].mxu1 %vm1368_vm6, %v1534_v16 }
 0x7e7   : > { %4313 = vmatprep.mubr.msk.f32.mxu1 %vm4735_vm1, %v4734_v22  ;;  %4312 = vmatpush3.msra.mxu1 %v1272_v19  ;;  %v4600_v19 = vld [vmem:[%s5551_s13 + $0x10] sm:$0xff]  }
 0x7e8   : > { %4316 = vmatprep.subr.mxu1 %v4734_v22 }
 0x7eb   : > { %v4629_v17 = vpop.eup %4628 }
 0x7ec   : > { %v1843_v18 = vsel %vm1354_vm5, %v4629_v17, 0.0 }
 0x7ed   : > { %1844 = vadd.xlane.f32.xlu1 %v1843_v18  ;;  %v4599_v18 = vld [vmem:[%s5551_s13 + $0x8] sm:$0xff]  }
 0x7fe   : > { %2001 = vrot.lane.b32.xlu1 %v5099_v36, %s5577_s23  ;;  %s5613_s23 = smov 112  }
 0x87a   : > { %v1845_v20 = vpop.xlane.xlu1 %1844 }
 0x87b   : > { %4630 = vrcp.f32 %v1845_v20  ;;  %v4601_v20 = vld [vmem:[%s5551_s13 + $0x18] sm:$0xff]  }
 0x87e   : > { %v2002_v28 = vpop.permute.xlu1 %2001 }
 0x885   : > { %v4631_v25 = vpop.eup %4630 }
 0x886   : > { %v1847_v27 = vmul.f32 %v4631_v25, %v4629_v17  ;;  %v4598_v17 = vld [vmem:[%s5551_s13] sm:$0xff]   ;;  %v4605_v25 = vld [vmem:[%s5551_s13 + $0x38] sm:$0xff]  }
 0x8b9   : > { %v1608_v23 = vpop.f32.mrb[10].mxu1 }
 0x8ba   : > { %v4310_v24 = vpop.f32.mrb[11].mxu1  ;;  %4314 = vmatmul.mubr.msk.f32.vlgmr.msra.gmra.mrb[12].mxu1 %vm1278_vm3, %v1608_v23  ;;  %v4603_v23 = vld [vmem:[%s5551_s13 + $0x28] sm:$0xff]  }
 0x8bb   : > { %4317 = vmatpush3.msra.mxu1 %v1271_v21  ;;  %4318 = vmatprep.mubr.msk.f32.mxu1 %vm4735_vm1, %v4734_v22  ;;  %v4602_v21 = vld [vmem:[%s5551_s13 + $0x20] sm:$0xff]   ;;  %v4604_v24 = vld [vmem:[%s5551_s13 + $0x30] sm:$0xff]  }
 0x8bc   : > { %4326 = vmatprep.subr.mxu1 %v4734_v22 }
 0x8be   : > { %4319 = vmatmul.mubr.msk.f32.vlgmr.msra.gmra.mrb[14].mxu1 %vm1278_vm3, %v1441_v60  ;;  %v4035_v60 = vld [vmem:[%s5546_s8] ss:$0 sm:$0xff] }
 0x8bf   : > { %4327 = vmatpush3.msk.msra.mxu1 %vm1372_vm4, %v1849_v26  ;;  %4328 = vmatprep.mubr.msk.f32.mxu1 %vm4735_vm1, %v4734_v22  ;;  %v4038_v26 = vld [vmem:[%s5550_s12] ss:$0 sm:$0xff] }
 0x8c0   : > { %4336 = vmatprep.subr.mxu1 %v4734_v22 }
 0x8c2   : > { %4329 = vmatmul.mubr.msk.f32.vlgmr.msra.gmra.mrb[16].mxu1 %vm1368_vm6, %v1847_v27 }
 0x8c3   : > { %4338 = vmatprep.mubr.msk.f32.mxu1 %vm4735_vm1, %v4734_v22 }
 0x8c6   : > { %4337 = vmatpush3.xpose.msk.msra.mxu1 %vm1278_vm3, %v2002_v28 }
 0x8c7   : > { %4346 = vmatprep.subr.mxu1 %v4734_v22 }
 0x8c9   : > { %4339 = vmatmul.mubr.msk.f32.vlgmr.msra.gmra.mrb[18].mxu1 %vm1278_vm3, %v2000_v29 }
 0x8ca   : > { %4348 = vmatprep.mubr.msk.f32.mxu1 %vm4735_vm1, %v4734_v22  ;;  %4347 = vmatpush3.msra.mxu1 %v1274_v54 }
 0x8cb   : > { %4359 = vmatprep.subr.bf16.mxu1 %v4734_v22 }
 0x98d   : > { %v1681_v31 = vpop.f32.mrb[12].mxu1 }
 0x98e   : > { %v4315_v32 = vpop.f32.mrb[13].mxu1 }
 0x991   : > { %v1754_v33 = vpop.f32.mrb[14].mxu1 }
 0x992   : > { %v1755_v34 = vadd.f32 %v1754_v33, %v1681_v31  ;;  %v4320_v35 = vpop.f32.mrb[15].mxu1 }
 0x995   : > { %v1921_v37 = vpop.f32.mrb[16].mxu1 }
 0x996   : > { %v4330_v38 = vpop.f32.mrb[17].mxu1  ;;  %4334 = vmatmul.mubr.msk.f32.vlgmr.msra.gmra.mrb[14].mxu0 %vm1278_vm3, %v1921_v37 }
 0x997   : > { %4343 = vmatprep.mubr.msk.f32.mxu0 %vm4735_vm1, %v4734_v22 }
 0x99c   : > { %v2073_v39 = vpop.f32.mrb[18].mxu1 }
 0x99d   : > { %v2077_v40 = vmul.f32 0.35355338, %v2073_v39  ;;  %v4340_v41 = vpop.f32.mrb[19].mxu1 }
 0x99f   : > { %v2078_v42 = vsel %vm1354_vm5, %v2077_v40, -inf }
 0x9a0   : > { %2079 = vmax.xlane.f32.xlu0 %v2078_v42 }
 0x9b6   : > { %2089 = vrot.lane.b32.xlu0 %v5099_v36, %s5576_s2  ;;  %s5617_s2 = smov 72  }
 0xa2d   : > { %v2080_v43 = vpop.xlane.xlu0 %2079 }
 0xa2e   : > { %v2081_v44 = vsub.f32 %v2077_v40, %v2080_v43  ;;  %v4042_v43 = vld [vmem:[%s5552_s14] ss:$0 sm:$0xff] }
 0xa30   : > { %v2082_v45 = vmul.f32 1.442695, %v2081_v44 }
 0xa31   : > { %v2090_v46 = vpop.permute.xlu0 %2089 }
 0xa32   : > { %4632 = vpow2.f32 %v2082_v45  ;;  %4342 = vmatpush3.msk.msra.mxu0 %vm1372_vm4, %v2090_v46 }
 0xa33   : > { %4351 = vmatprep.subr.bf16.mxu0 %v4734_v22 }
 0xa3c   : > { %v4633_v47 = vpop.eup %4632 }
 0xa3d   : > { %v2084_v48 = vsel %vm1354_vm5, %v4633_v47, 0.0 }
 0xa3e   : > { %2085 = vadd.xlane.f32.xlu1 %v2084_v48 }
 0xa69   : > { %v1994_v49 = vpop.f32.mrb[14].mxu0 }
 0xa6a   : > { %v1998_v50 = vadd.f32 %v1994_v49, %v1755_v34  ;;  %v4335_v51 = vpop.f32.mrb[15].mxu0 }
 0xacb   : > { %v2086_v52 = vpop.xlane.xlu1 %2085 }
 0xacc   : > { %4634 = vrcp.f32 %v2086_v52 }
 0xad6   : > { %v4635_v53 = vpop.eup %4634 }
 0xad7   : > { %v2088_v36 = vmul.f32 %v4635_v53, %v4633_v47 }
 0xad9   : > { %4344 = vmatmul.mubr.msk.f32.vlgmr.msra.gmra.mrb[16].mxu0 %vm1368_vm6, %v2088_v36 }
 0xada   : > { %4355 = vmatprep.mubr.msk.bf16.mxu0 %vm4735_vm1, %v4734_v22  ;;  %4352 = vmatpush3.bf16.msra.mxu0 %v4596_v5 }
 0xadb   : > { %4353 = vmatprep.subr.bf16.mxu0 %v4734_v22 }
 0xbac   : > { %v2162_v55 = vpop.f32.mrb[16].mxu0 }
 0xbad   : > { %v4345_v56 = vpop.f32.mrb[17].mxu0  ;;  %4349 = vmatmul.mubr.msk.f32.vlgmr.msra.gmra.mrb[20].mxu1 %vm1278_vm3, %v2162_v55  ;;  %v4606_v55 = vld [vmem:[%s5602_s4 + $0x10] sm:$0xff]  }
 0xbae   : > { %4375 = vmatprep.mubr.msk.bf16.mxu1 %vm4735_vm1, %v4734_v22  ;;  %4360 = vmatpush3.bf16.msra.mxu1 %v4598_v17  ;;  %v4607_v56 = vld [vmem:[%s5602_s4 + $0x18] sm:$0xff]  }
 0xbaf   : > { %4361 = vmatprep.subr.bf16.mxu1 %v4734_v22 }
 0xbb2   : > { %4362 = vmatpush3.bf16.msra.mxu1 %v4599_v18 }
 0xbb3   : > { %4363 = vmatprep.subr.bf16.mxu1 %v4734_v22 }
 0xbb6   : > { %4364 = vmatpush3.bf16.msra.mxu1 %v4600_v19 }
 0xbb7   : > { %4365 = vmatprep.subr.bf16.mxu1 %v4734_v22 }
 0xbba   : > { %4366 = vmatpush3.bf16.msra.mxu1 %v4601_v20 }
 0xbbb   : > { %4367 = vmatprep.subr.bf16.mxu1 %v4734_v22 }
 0xbbe   : > { %4368 = vmatpush3.bf16.msra.mxu1 %v4602_v21 }
 0xbbf   : > { %4369 = vmatprep.subr.bf16.mxu1 %v4734_v22 }
 0xbc2   : > { %4370 = vmatpush3.bf16.msra.mxu1 %v4603_v23 }
 0xbc3   : > { %4371 = vmatprep.subr.bf16.mxu1 %v4734_v22 }
 0xbc6   : > { %4372 = vmatpush3.bf16.msra.mxu1 %v4604_v24 }
 0xbc7   : > { %4373 = vmatprep.subr.bf16.mxu1 %v4734_v22 }
 0xbca   : > { %4374 = vmatpush3.bf16.msra.mxu1 %v4605_v25 }
 0xbcb   : > { %4412 = vmatprep.subr.mxu1 %v4734_v22 }
 0xc80   : > { %v2235_v57 = vpop.f32.mrb[20].mxu1 }
 0xc81   : > { %v2239_v58 = vadd.f32 %v2235_v57, %v1998_v50  ;;  %v4350_v59 = vpop.f32.mrb[21].mxu1 }
 0xc83   : > { %v2240_v61 = vadd.f32 %v2239_v58, %v5067_v14  ;;  %v4597_v14 = vld [vmem:[%s5549_s11 + $0x8] sm:$0xff]  }
 0xc84   : > { %4354 = vmatpush3.bf16.msra.mxu0 %v4597_v14 }
 0xc85   : > { %v5204_v62 = vadd.f32 %v4035_v60, %v2240_v61  ;;  %4379 = vmatprep.subr.bf16.mxu0 %v4734_v22  ;;  %v4053_v61 = vld [vmem:[%s5604_s21 + $0x1] ss:$0 sm:$0xff] }
 0xc87   : > { %v2251_v63 = vsel %vm1174_vm0, %v5204_v62, 0.0 }
 0xc88   : > { %2252 = vadd.xlane.f32.xlu1 %v2251_v63  ;;  %v4054_v63 = vld [vmem:[%s5606_s22 + $0x1] ss:$0 sm:$0xff] }
 0xd15   : > { %v2253_v0 = vpop.xlane.xlu1 %2252 }
 0xd16   : > { %v2254_v1 = vmul.f32 0.03125, %v2253_v0 }
 0xd18   : > { %v2255_v2 = vsub.f32 %v5204_v62, %v2254_v1 }
 0xd1a   : > { %v2256_v3 = vmul.f32 %v2255_v2, %v2255_v2 }
 0xd1c   : > { %v2257_v4 = vsel %vm1174_vm0, %v2256_v3, 0.0  ;;  %v4060_v3 = vld [vmem:[%s5607_s6 + $0x1] ss:$0 sm:$0xff]  ;;  %s4674_s6 = sshll.u32 %s4748_s3, 4  ;;  %s4675_s6 = int_to_ptr.vmem [resolvable:$false] %s4674_s6 }
 0xd1d   : > { %2258 = vadd.xlane.f32.xlu1 %v2257_v4 }
 0xdaa   : > { %v2259_v6 = vpop.xlane.xlu1 %2258 }
 0xdab   : > { %v2260_v7 = vmul.f32 0.03125, %v2259_v6 }
 0xdad   : > { %v2261_v8 = vadd.f32 1e-05, %v2260_v7 }
 0xdaf   : > { %4636 = vrsqrt.f32 %v2261_v8 }
 0xdb9   : > { %v4637_v9 = vpop.eup %4636 }
 0xdba   : > { %v2263_v11 = vmul.f32 %v4637_v9, %v2255_v2 }
 0xdbc   : > { %v2270_v13 = vmul.f32 %v4036_v10, %v2263_v11 }
 0xdbe   : > { %v2277_v15 = vadd.f32 %v4037_v12, %v2270_v13 }
 0xdc0   : > { %v2282_v16 = vpack.c.bf16 %v2277_v15, %v2277_v15 }
 0xdc2   : > { %4356 = vmatmul.mubr.msk.bf16.vlgmr.msra.gmra.mrb[20].mxu0 %vm1227_vm2, %v2282_v16 }
 0xdc3   : > { %4383 = vmatprep.mubr.msk.bf16.mxu0 %vm4735_vm1, %v4734_v22  ;;  %4380 = vmatpush3.bf16.msra.mxu0 %v4606_v55 }
 0xdc4   : > { %4381 = vmatprep.subr.bf16.mxu0 %v4734_v22 }
 0xdc7   : > { %4382 = vmatpush3.bf16.msra.mxu0 %v4607_v56 }
 0xdc8   : > { %4387 = vmatprep.subr.mxu0 %v4734_v22 }
 0xe95   : > { %v2339_v27 = vpop.f32.mrb[20].mxu0 }
 0xe96   : > { %v2340_v28 = vadd.f32 %v4038_v26, %v2339_v27  ;;  %v4357_v29 = vpop.f32.mrb[21].mxu0  ;;  %v4064_v26 = vld [vmem:[%s5608_s7 + $0x20] sm:$0xff] }
 0xe97   : > { %v2342_v30 = vpop.f32.mrb[22].mxu0 }
 0xe98   : > { %v2345_v31 = vmul.f32 %v2340_v28, %v2340_v28  ;;  %v4358_v32 = vpop.f32.mrb[23].mxu0 }
 0xe9a   : > { %v2346_v33 = vmul.f32 %v2345_v31, %v2340_v28 }
 0xe9c   : > { %v2347_v34 = vmul.f32 0.044715, %v2346_v33 }
 0xe9e   : > { %v2348_v35 = vadd.f32 %v2347_v34, %v2340_v28 }
 0xea0   : > { %v2349_v37 = vmul.f32 0.7978846, %v2348_v35 }
 0xea2   : > { %4638 = vtanh.f32 %v2349_v37 }
 0xeac   : > { %v4639_v38 = vpop.eup %4638 }
 0xead   : > { %v2351_v39 = vadd.f32 1.0, %v4639_v38 }
 0xeaf   : > { %v2352_v40 = vmul.f32 0.5, %v2351_v39 }
 0xeb1   : > { %v2353_v41 = vmul.f32 %v2352_v40, %v2340_v28 }
 0xeb3   : > { %v2370_v42 = vpack.c.bf16 %v2353_v41, %v2353_v41 }
 0xeb5   : > { %4376 = vmatmul.mubr.bf16.vlgmr.msra.gmra.mrb[24].mxu1 %v2370_v42 }
 0xeb6   : > { %4414 = vmatprep.mubr.msk.f32.mxu1 %vm4735_vm1, %v4734_v22  ;;  %4413 = vmatpush3.msra.mxu1 %v4064_v26 }
 0xeb7   : > { %4422 = vmatprep.subr.mxu1 %v4734_v22 }
 0xf88   : > { %v2460_v44 = vpop.f32.mrb[24].mxu1 }
 0xf89   : > { %v2461_v45 = vadd.f32 %v4042_v43, %v2460_v44  ;;  %v4377_v46 = vpop.f32.mrb[25].mxu1 }
 0xf8a   : > { %v2463_v47 = vpop.f32.mrb[26].mxu1 }
 0xf8b   : > { %v5268_v48 = vadd.f32 %v2461_v45, %v5204_v62  ;;  %v4378_v49 = vpop.f32.mrb[27].mxu1  ;;  %v4065_v45 = vld [vmem:[%s5608_s7 + $0x28] sm:$0xff] }
 0xf8d   : > { %v2471_v50 = vsel %vm1174_vm0, %v5268_v48, 0.0 }
 0xf8e   : > { %2472 = vadd.xlane.f32.xlu0 %v2471_v50 }
0x101b   : > { %v2473_v51 = vpop.xlane.xlu0 %2472 }
0x101c   : > { %v2474_v52 = vmul.f32 0.03125, %v2473_v51 }
0x101e   : > { %v2475_v53 = vsub.f32 %v5268_v48, %v2474_v52 }
0x1020   : > { %v2476_v36 = vmul.f32 %v2475_v53, %v2475_v53 }
0x1022   : > { %v2477_v54 = vsel %vm1174_vm0, %v2476_v36, 0.0 }
0x1023   : > { %2478 = vadd.xlane.f32.xlu1 %v2477_v54 }
0x10b0   : > { %v2479_v57 = vpop.xlane.xlu1 %2478 }
0x10b1   : > { %v2480_v58 = vmul.f32 0.03125, %v2479_v57 }
0x10b3   : > { %v2481_v59 = vadd.f32 1e-05, %v2480_v58 }
0x10b5   : > { %4640 = vrsqrt.f32 %v2481_v59 }
0x10bf   : > { %v4641_v60 = vpop.eup %4640 }
0x10c0   : > { %v2483_v62 = vmul.f32 %v4641_v60, %v2475_v53 }
0x10c2   : > { %v2490_v0 = vmul.f32 %v4053_v61, %v2483_v62 }
0x10c4   : > { %v2497_v1 = vadd.f32 %v4054_v63, %v2490_v0 }
0x10c6   : > { %v2503_v2 = vpack.c.bf16 %v2497_v1, %v2497_v1 }
0x10c8   : > { %4384 = vmatmul.mubr.msk.bf16.vlgmr.msra.gmra.mrb[24].mxu0 %vm1227_vm2, %v2503_v2 }
0x10c9   : > { %4389 = vmatprep.mubr.msk.f32.mxu0 %vm4735_vm1, %v4734_v22 }
0x119b   : > { %v2561_v4 = vpop.f32.mrb[24].mxu0 }
0x119c   : > { %v5294_v5 = vadd.f32 %v4060_v3, %v2561_v4  ;;  %v4385_v14 = vpop.f32.mrb[25].mxu0  ;;  %v4066_v4 = vld [vmem:[%s5608_s7 + $0x30] sm:$0xff] }
0x119d   : > { %v2564_v6 = vpop.f32.mrb[26].mxu0 }
0x119e   : > { %2661 = vrot.lane.b32.xlu0 %v5294_v5, %s4736_s28  ;;  %2573 = vrot.lane.b32.xlu1 %v5294_v5, %s5609_s1  ;;  %v4386_v7 = vpop.f32.mrb[27].mxu0  ;;  %s5610_s28 = smov 120   ;;  %s5619_s1 = sld [smem:[#allocation19_spill]] }
0x11a4   : > { %s5496_s4 = scalar_lea.hbm %s5619_s1, %s4131_s29 }
0x1210   : > { %v2574_v8 = vpop.permute.xlu1 %2573  ;;  %v2662_v9 = vpop.permute.xlu0 %2661 }
0x1211   : > { %4388 = vmatpush3.xpose.msk.msra.mxu0 %vm1278_vm3, %v2574_v8 }
0x1212   : > { %4392 = vmatprep.subr.mxu0 %v4734_v22 }
0x1214   : > { %4390 = vmatmul.mubr.msk.f32.vlgmr.msra.gmra.mrb[18].mxu0 %vm1278_vm3, %v5294_v5 }
0x1215   : > { %4393 = vmatpush3.msk.msra.mxu0 %vm1372_vm4, %v2662_v9  ;;  %4394 = vmatprep.mubr.msk.f32.mxu0 %vm4735_vm1, %v4734_v22 }
0x1216   : > { %4397 = vmatprep.subr.mxu0 %v4734_v22 }
0x12e7   : > { %v2645_v10 = vpop.f32.mrb[18].mxu0 }
0x12e8   : > { %v2649_v11 = vmul.f32 0.35355338, %v2645_v10  ;;  %v4391_v12 = vpop.f32.mrb[19].mxu0 }
0x12ea   : > { %v2650_v13 = vsel %vm1354_vm5, %v2649_v11, -inf }
0x12eb   : > { %2651 = vmax.xlane.f32.xlu1 %v2650_v13 }
0x12fc   : > { %2738 = vrot.lane.b32.xlu1 %v5294_v5, %s5610_s28  ;;  %s5615_s28 = smov 48  }
0x1378   : > { %v2652_v15 = vpop.xlane.xlu1 %2651 }
0x1379   : > { %v2653_v16 = vsub.f32 %v2649_v11, %v2652_v15 }
0x137b   : > { %v2654_v17 = vmul.f32 1.442695, %v2653_v16 }
0x137c   : > { %v2739_v25 = vpop.permute.xlu1 %2738 }
0x137d   : > { %4642 = vpow2.f32 %v2654_v17 }
0x1387   : > { %v4643_v18 = vpop.eup %4642 }
0x1388   : > { %v2656_v19 = vsel %vm1354_vm5, %v4643_v18, 0.0 }
0x1389   : > { %2657 = vadd.xlane.f32.xlu0 %v2656_v19 }
0x139f   : > { %2740 = vrot.lane.b32.xlu0 %v5294_v5, %s5611_s30  ;;  %s5616_s30 = smov 104  }
0x1416   : > { %v2658_v20 = vpop.xlane.xlu0 %2657 }
0x1417   : > { %4644 = vrcp.f32 %v2658_v20 }
0x141a   : > { %v2741_v24 = vpop.permute.xlu0 %2740 }
0x1421   : > { %v4645_v21 = vpop.eup %4644 }
0x1422   : > { %v2660_v23 = vmul.f32 %v4645_v21, %v4643_v18 }
0x1424   : > { %4395 = vmatmul.mubr.msk.f32.vlgmr.msra.gmra.mrb[28].mxu0 %vm1368_vm6, %v2660_v23 }
0x1425   : > { %4398 = vmatpush3.xpose.msk.msra.mxu0 %vm1278_vm3, %v2741_v24  ;;  %4399 = vmatprep.mubr.msk.f32.mxu0 %vm4735_vm1, %v4734_v22  ;;  %v4067_v24 = vld [vmem:[%s5608_s7 + $0x38] sm:$0xff]  ;;  %s4676_s7 = scalar_lea.vmem %s4675_s6, 32 }
0x1426   : > { %4402 = vmatprep.subr.mxu0 %v4734_v22 }
0x1428   : > { %4400 = vmatmul.mubr.msk.f32.vlgmr.msra.gmra.mrb[30].mxu0 %vm1278_vm3, %v2739_v25 }
0x1429   : > { %4404 = vmatprep.mubr.msk.f32.mxu0 %vm4735_vm1, %v4734_v22 }
0x14f7   : > { %v2734_v27 = vpop.f32.mrb[28].mxu0 }
0x14f8   : > { %v4396_v28 = vpop.f32.mrb[29].mxu0  ;;  %4415 = vmatmul.mubr.msk.f32.vlgmr.msra.gmra.mrb[22].mxu1 %vm1278_vm3, %v2734_v27 }
0x14f9   : > { %4424 = vmatprep.mubr.msk.f32.mxu1 %vm4735_vm1, %v4734_v22 }
0x14fb   : > { %v2812_v29 = vpop.f32.mrb[30].mxu0 }
0x14fc   : > { %v2816_v30 = vmul.f32 0.35355338, %v2812_v29  ;;  %v4401_v31 = vpop.f32.mrb[31].mxu0 }
0x14fe   : > { %v2817_v32 = vsel %vm1354_vm5, %v2816_v30, -inf }
0x14ff   : > { %2818 = vmax.xlane.f32.xlu0 %v2817_v32 }
0x1515   : > { %2828 = vrot.lane.b32.xlu0 %v5294_v5, %s5612_s0 }
0x1519   : > { %3051 = vrot.lane.b32.xlu0 %v5294_v5, %s5613_s23  ;;  %s5618_s23 = smov 40  }
0x158c   : > { %v2819_v33 = vpop.xlane.xlu0 %2818 }
0x158d   : > { %v2820_v34 = vsub.f32 %v2816_v30, %v2819_v33  ;;  %v4089_v30 = vld [vmem:[%s5546_s8 + $0x1] ss:$0 sm:$0xff] }
0x158f   : > { %v2821_v35 = vmul.f32 1.442695, %v2820_v34 }
0x1590   : > { %v2829_v37 = vpop.permute.xlu0 %2828 }
0x1591   : > { %4646 = vpow2.f32 %v2821_v35  ;;  %4403 = vmatpush3.msk.msra.mxu0 %vm1372_vm4, %v2829_v37 }
0x1592   : > { %4407 = vmatprep.subr.mxu0 %v4734_v22 }
0x1594   : > { %v3052_v50 = vpop.permute.xlu0 %3051 }
0x159b   : > { %v4647_v38 = vpop.eup %4646 }
0x159c   : > { %v2823_v39 = vsel %vm1354_vm5, %v4647_v38, 0.0 }
0x159d   : > { %2824 = vadd.xlane.f32.xlu1 %v2823_v39 }
0x15ae   : > { %3053 = vrot.lane.b32.xlu1 %v5294_v5, %s5614_s27 }
0x15cb   : > { %v3047_v40 = vpop.f32.mrb[22].mxu1 }
0x15cc   : > { %v4416_v41 = vpop.f32.mrb[23].mxu1 }
0x162a   : > { %v2825_v42 = vpop.xlane.xlu1 %2824 }
0x162b   : > { %4648 = vrcp.f32 %v2825_v42 }
0x162e   : > { %v3054_v47 = vpop.permute.xlu1 %3053 }
0x1635   : > { %v4649_v43 = vpop.eup %4648 }
0x1636   : > { %v2827_v44 = vmul.f32 %v4649_v43, %v4647_v38 }
0x1638   : > { %4405 = vmatmul.mubr.msk.f32.vlgmr.msra.gmra.mrb[32].mxu0 %vm1368_vm6, %v2827_v44 }
0x1639   : > { %4408 = vmatpush3.msra.mxu0 %v4065_v45  ;;  %4409 = vmatprep.mubr.msk.f32.mxu0 %vm4735_vm1, %v4734_v22  ;;  %v4092_v45 = vld [vmem:[%s5547_s9 + $0x1] ss:$0 sm:$0xff] }
0x163a   : > { %4417 = vmatprep.subr.mxu0 %v4734_v22 }
0x170b   : > { %v2901_v46 = vpop.f32.mrb[32].mxu0 }
0x170c   : > { %v4406_v49 = vpop.f32.mrb[33].mxu0  ;;  %4410 = vmatmul.mubr.msk.f32.vlgmr.msra.gmra.mrb[34].mxu0 %vm1278_vm3, %v2901_v46 }
0x170d   : > { %4418 = vmatpush3.xpose.msk.msra.mxu0 %vm1278_vm3, %v3054_v47  ;;  %4419 = vmatprep.mubr.msk.f32.mxu0 %vm4735_vm1, %v4734_v22  ;;  %v4093_v47 = vld [vmem:[%s5548_s10 + $0x1] ss:$0 sm:$0xff] }
0x170e   : > { %4427 = vmatprep.subr.mxu0 %v4734_v22 }
0x1710   : > { %4420 = vmatmul.mubr.msk.f32.vlgmr.msra.gmra.mrb[36].mxu0 %vm1278_vm3, %v3052_v50 }
0x1711   : > { %4429 = vmatprep.mubr.msk.f32.mxu0 %vm4735_vm1, %v4734_v22  ;;  %4428 = vmatpush3.msra.mxu0 %v4066_v4 }
0x1712   : > { %4437 = vmatprep.subr.mxu0 %v4734_v22 }
0x17df   : > { %v2974_v51 = vpop.f32.mrb[34].mxu0 }
0x17e0   : > { %v3048_v52 = vadd.f32 %v3047_v40, %v2974_v51  ;;  %v4411_v53 = vpop.f32.mrb[35].mxu0  ;;  %v4608_v40 = vld [vmem:[%s5549_s11 + $0x10] sm:$0xff]  }
0x17e1   : > { %v4611_v53 = vld [vmem:[%s5551_s13 + $0x48] sm:$0xff]  }
0x17e3   : > { %v3125_v36 = vpop.f32.mrb[36].mxu0 }
0x17e4   : > { %v3129_v54 = vmul.f32 0.35355338, %v3125_v36  ;;  %v4421_v55 = vpop.f32.mrb[37].mxu0  ;;  %v4612_v36 = vld [vmem:[%s5551_s13 + $0x50] sm:$0xff]  }
0x17e5   : > { %v4614_v55 = vld [vmem:[%s5551_s13 + $0x60] sm:$0xff]  }
0x17e6   : > { %v3130_v56 = vsel %vm1354_vm5, %v3129_v54, -inf }
0x17e7   : > { %3131 = vmax.xlane.f32.xlu0 %v3130_v56  ;;  %v4615_v56 = vld [vmem:[%s5551_s13 + $0x68] sm:$0xff]  }
0x17fd   : > { %3141 = vrot.lane.b32.xlu0 %v5294_v5, %s5615_s28 }
0x1801   : > { %3292 = vrot.lane.b32.xlu0 %v5294_v5, %s5616_s30 }
0x1874   : > { %v3132_v57 = vpop.xlane.xlu0 %3131 }
0x1875   : > { %v3133_v58 = vsub.f32 %v3129_v54, %v3132_v57  ;;  %v4613_v54 = vld [vmem:[%s5551_s13 + $0x58] sm:$0xff]   ;;  %v4616_v57 = vld [vmem:[%s5551_s13 + $0x70] sm:$0xff]  }
0x1877   : > { %v3134_v59 = vmul.f32 1.442695, %v3133_v58  ;;  %v4617_v58 = vld [vmem:[%s5551_s13 + $0x78] sm:$0xff]  }
0x1878   : > { %v3142_v60 = vpop.permute.xlu0 %3141 }
0x1879   : > { %4650 = vpow2.f32 %v3134_v59  ;;  %4423 = vmatpush3.msk.msra.mxu1 %vm1372_vm4, %v3142_v60  ;;  %v4099_v59 = vld [vmem:[%s5550_s12 + $0x1] ss:$0 sm:$0xff] }
0x187a   : > { %4432 = vmatprep.subr.mxu1 %v4734_v22 }
0x187c   : > { %v3293_v3 = vpop.permute.xlu0 %3292 }
0x1883   : > { %v4651_v61 = vpop.eup %4650 }
0x1884   : > { %v3136_v62 = vsel %vm1354_vm5, %v4651_v61, 0.0 }
0x1885   : > { %3137 = vadd.xlane.f32.xlu1 %v3136_v62 }
0x1896   : > { %3294 = vrot.lane.b32.xlu1 %v5294_v5, %s5617_s2  ;;  %s647_s2 = sand.u32 1, %s4724_s25  }
0x1897   : > { %s648_s0 = scalar_lea.vmem [#allocation2], %s647_s2  ;;  %s3889_s28 = scalar_lea.sflag [#allocation3], %s647_s2 }
0x1912   : > { %v3138_v63 = vpop.xlane.xlu1 %3137 }
0x1913   : > { %4652 = vrcp.f32 %v3138_v63 }
0x1916   : > { %v3295_v2 = vpop.permute.xlu1 %3294 }
0x191d   : > { %v4653_v0 = vpop.eup %4652 }
0x191e   : > { %v3140_v1 = vmul.f32 %v4653_v0, %v4651_v61 }
0x1920   : > { %4425 = vmatmul.mubr.msk.f32.vlgmr.msra.gmra.mrb[28].mxu1 %vm1368_vm6, %v3140_v1 }
0x1921   : > { %4433 = vmatpush3.xpose.msk.msra.mxu1 %vm1278_vm3, %v3295_v2  ;;  %4434 = vmatprep.mubr.msk.f32.mxu1 %vm4735_vm1, %v4734_v22 }
0x1922   : > { %4442 = vmatprep.subr.mxu1 %v4734_v22 }
0x1924   : > { %4435 = vmatmul.mubr.msk.f32.vlgmr.msra.gmra.mrb[30].mxu1 %vm1278_vm3, %v3293_v3 }
0x1925   : > { %4444 = vmatprep.mubr.msk.f32.mxu1 %vm4735_vm1, %v4734_v22  ;;  %4443 = vmatpush3.msra.mxu1 %v4067_v24 }
0x1926   : > { %4455 = vmatprep.subr.bf16.mxu1 %v4734_v22 }
0x19f3   : > { %v3214_v14 = vpop.f32.mrb[28].mxu1 }
0x19f4   : > { %v4426_v6 = vpop.f32.mrb[29].mxu1  ;;  %4430 = vmatmul.mubr.msk.f32.vlgmr.msra.gmra.mrb[38].mxu0 %vm1278_vm3, %v3214_v14 }
0x19f5   : > { %4439 = vmatprep.mubr.msk.f32.mxu0 %vm4735_vm1, %v4734_v22 }
0x19f7   : > { %v3366_v7 = vpop.f32.mrb[30].mxu1 }
0x19f8   : > { %v3370_v8 = vmul.f32 0.35355338, %v3366_v7  ;;  %v4436_v9 = vpop.f32.mrb[31].mxu1 }
0x19fa   : > { %v3371_v10 = vsel %vm1354_vm5, %v3370_v8, -inf }
0x19fb   : > { %3372 = vmax.xlane.f32.xlu0 %v3371_v10  ;;  %v4120_v10 = vld [vmem:[%s5552_s14 + $0x1] ss:$0 sm:$0xff] }
0x1a11   : > { %3382 = vrot.lane.b32.xlu0 %v5294_v5, %s5618_s23  ;;  %s3901_s23 = sshll.u32 %s648_s0, 4  ;;  %s5498_s23 = int_to_ptr.vmem [resolvable:$true] %s3901_s23 }
0x1a12   : > { %s4670_s30 = scalar_lea.vmem %s5498_s23, 16  ;;  %p4677_p0 = scmp.lt.s32.totalorder %s5498_s23, %s4675_s6 }
0x1a13   : > { %p4671_p11 = scmp.ne.s32.totalorder %s5498_s23, %s4670_s30  ;;  %p4678_p1 = scmp.lt.s32.totalorder %s4676_s7, %s4670_s30 }
0x1a15   : > { %p4672_p12 = pnand %p4671_p11, %p4897_p5  ;;  %p4679_p2 = por %p4678_p1, %p4677_p0 }
0x1a17   : > { %p4673_p13 = pneg %p4672_p12 }
0x1a19   : > { %p4680_p3 = pnand %p4679_p2, %p4673_p13 }
0x1a88   : > { %v3373_v11 = vpop.xlane.xlu0 %3372 }
0x1a89   : > { %v3374_v12 = vsub.f32 %v3370_v8, %v3373_v11 }
0x1a8b   : > { %v3375_v13 = vmul.f32 1.442695, %v3374_v12 }
0x1a8c   : > { %v3383_v15 = vpop.permute.xlu0 %3382 }
0x1a8d   : > { %4654 = vpow2.f32 %v3375_v13  ;;  %4438 = vmatpush3.msk.msra.mxu0 %vm1372_vm4, %v3383_v15 }
0x1a8e   : > { %4447 = vmatprep.subr.bf16.mxu0 %v4734_v22 }
0x1a97   : > { %v4655_v16 = vpop.eup %4654 }
0x1a98   : > { %v3377_v17 = vsel %vm1354_vm5, %v4655_v16, 0.0 }
0x1a99   : > { %3378 = vadd.xlane.f32.xlu1 %v3377_v17 }
0x1ac7   : > { %v3287_v18 = vpop.f32.mrb[38].mxu0 }
0x1ac8   : > { %v3291_v19 = vadd.f32 %v3287_v18, %v3048_v52  ;;  %v4431_v20 = vpop.f32.mrb[39].mxu0  ;;  %v4610_v52 = vld [vmem:[%s5551_s13 + $0x40] sm:$0xff]  }
0x1b26   : > { %v3379_v21 = vpop.xlane.xlu1 %3378 }
0x1b27   : > { %4656 = vrcp.f32 %v3379_v21 }
0x1b31   : > { %v4657_v23 = vpop.eup %4656 }
0x1b32   : > { %v3381_v5 = vmul.f32 %v4657_v23, %v4655_v16 }
0x1b34   : > { %4440 = vmatmul.mubr.msk.f32.vlgmr.msra.gmra.mrb[40].mxu0 %vm1368_vm6, %v3381_v5 }
0x1b35   : > { %4451 = vmatprep.mubr.msk.bf16.mxu0 %vm4735_vm1, %v4734_v22  ;;  %4448 = vmatpush3.bf16.msra.mxu0 %v4608_v40  ;;  %v3802_v40 = vld [vmem:[%s5557_s19] sm:$0xff] }
0x1b36   : > { %4449 = vmatprep.subr.bf16.mxu0 %v4734_v22 }
0x1c07   : > { %v3455_v25 = vpop.f32.mrb[40].mxu0 }
0x1c08   : > { %v4441_v26 = vpop.f32.mrb[41].mxu0  ;;  %4445 = vmatmul.mubr.msk.f32.vlgmr.msra.gmra.mrb[32].mxu1 %vm1278_vm3, %v3455_v25 }
0x1c09   : > { %4471 = vmatprep.mubr.msk.bf16.mxu1 %vm4735_vm1, %v4734_v22  ;;  %4456 = vmatpush3.bf16.msra.mxu1 %v4610_v52 }
0x1c0a   : > { %4457 = vmatprep.subr.bf16.mxu1 %v4734_v22 }
0x1c0d   : > { %4458 = vmatpush3.bf16.msra.mxu1 %v4611_v53  ;;  %v3786_v53 = vld [vmem:[%s5556_s18] sm:$0x1] }
0x1c0e   : > { %4459 = vmatprep.subr.bf16.mxu1 %v4734_v22 }
0x1c11   : > { %4460 = vmatpush3.bf16.msra.mxu1 %v4612_v36 }
0x1c12   : > { %4461 = vmatprep.subr.bf16.mxu1 %v4734_v22 }
0x1c15   : > { %4462 = vmatpush3.bf16.msra.mxu1 %v4613_v54 }
0x1c16   : > { %4463 = vmatprep.subr.bf16.mxu1 %v4734_v22 }
0x1c19   : > { %4464 = vmatpush3.bf16.msra.mxu1 %v4614_v55  ;;  %v3806_v55 = vld [vmem:[%s5558_s20] sm:$0x1] }
0x1c1a   : > { %4465 = vmatprep.subr.bf16.mxu1 %v4734_v22 }
0x1c1d   : > { %4466 = vmatpush3.bf16.msra.mxu1 %v4615_v56 }
0x1c1e   : > { %4467 = vmatprep.subr.bf16.mxu1 %v4734_v22 }
0x1c21   : > { %4468 = vmatpush3.bf16.msra.mxu1 %v4616_v57 }
0x1c22   : > { %4469 = vmatprep.subr.bf16.mxu1 %v4734_v22 }
0x1c25   : > { %4470 = vmatpush3.bf16.msra.mxu1 %v4617_v58 }
0x1cdb   : > { %v3528_v27 = vpop.f32.mrb[32].mxu1 }
0x1cdc   : > { %v3532_v28 = vadd.f32 %v3528_v27, %v3291_v19  ;;  %v4446_v29 = vpop.f32.mrb[33].mxu1 }
0x1cde   : > { %v3533_v31 = vadd.f32 %v3532_v28, %v5268_v48  ;;  %v4609_v48 = vld [vmem:[%s5549_s11 + $0x18] sm:$0xff]   ;;  %v3767_v28 = vld [vmem:[%s5553_s15] sm:$0x1] }
0x1cdf   : > { %4450 = vmatpush3.bf16.msra.mxu0 %v4609_v48  ;;  %v3803_v48 = vld [vmem:[%s5557_s19 + $0x8] sm:$0xff] }
0x1ce0   : > { %v5399_v32 = vadd.f32 %v4089_v30, %v3533_v31  ;;  %v3768_v30 = vld [vmem:[%s5554_s16] sm:$0x1] }
0x1ce2   : > { %v3547_v33 = vsel %vm1174_vm0, %v5399_v32, 0.0 }
0x1ce3   : > { %3548 = vadd.xlane.f32.xlu1 %v3547_v33 }
0x1d70   : > { %v3549_v34 = vpop.xlane.xlu1 %3548 }
0x1d71   : > { %v3550_v35 = vmul.f32 0.03125, %v3549_v34 }
0x1d73   : > { %v3551_v37 = vsub.f32 %v5399_v32, %v3550_v35 }
0x1d75   : > { %v3552_v38 = vmul.f32 %v3551_v37, %v3551_v37 }
0x1d77   : > { %v3553_v39 = vsel %vm1174_vm0, %v3552_v38, 0.0 }
0x1d78   : > { %3554 = vadd.xlane.f32.xlu1 %v3553_v39 }
0x1e05   : > { %v3555_v41 = vpop.xlane.xlu1 %3554 }
0x1e06   : > { %v3556_v42 = vmul.f32 0.03125, %v3555_v41  ;;  %v4487_v41 = vpack.c.bf16 %v3803_v48, %v3802_v40 }
0x1e08   : > { %v3557_v43 = vadd.f32 1e-05, %v3556_v42  ;;  %v4747_v42 = vmov 0.0|0.0  }
0x1e09   : > { %4486 = vmatprep.subr.bf16.mxu0 %v4747_v42 }
0x1e0a   : > { %4658 = vrsqrt.f32 %v3557_v43  ;;  %v3804_v43 = vld [vmem:[%s5557_s19 + $0x10] sm:$0xff] }
0x1e14   : > { %v4659_v44 = vpop.eup %4658 }
0x1e15   : > { %v3559_v46 = vmul.f32 %v4659_v44, %v3551_v37  ;;  %v3805_v44 = vld [vmem:[%s5557_s19 + $0x18] sm:$0xff] }
0x1e17   : > { %v3566_v49 = vmul.f32 %v4092_v45, %v3559_v46  ;;  %v4490_v45 = vpack.c.bf16 %v3805_v44, %v3804_v43 }
0x1e19   : > { %v3573_v50 = vadd.f32 %v4093_v47, %v3566_v49 }
0x1e1b   : > { %v3579_v51 = vpack.c.bf16 %v3573_v50, %v3573_v50 }
0x1e1d   : > { %4452 = vmatmul.mubr.msk.bf16.vlgmr.msra.gmra.mrb[44].mxu0 %vm1227_vm2, %v3579_v51  ;;  %v3785_v51 = vld [vmem:[%s5555_s17] sm:$0x1] }
0x1e1e   : > { %4483 = vmatprep.mubr.msk.f32.mxu0 %vm4735_vm1, %v4734_v22  ;;  %4488 = vmatpush3.bf16.msra.mxu0 %v4487_v41 }
0x1e1f   : > { %4489 = vmatprep.subr.bf16.mxu0 %v4747_v42 }
0x1e22   : > { %4491 = vmatpush3.bf16.msra.mxu0 %v4490_v45 }
0x1ef0   : > { %v3637_v60 = vpop.f32.mrb[44].mxu0 }
0x1ef1   : > { %v3638_v61 = vadd.f32 %v4099_v59, %v3637_v60  ;;  %v4453_v62 = vpop.f32.mrb[45].mxu0 }
0x1ef2   : > { %v3640_v63 = vpop.f32.mrb[46].mxu0 }
0x1ef3   : > { %v3643_v0 = vmul.f32 %v3638_v61, %v3638_v61  ;;  %v4454_v1 = vpop.f32.mrb[47].mxu0 }
0x1ef5   : > { %v3644_v2 = vmul.f32 %v3643_v0, %v3638_v61 }
0x1ef7   : > { %v3645_v3 = vmul.f32 0.044715, %v3644_v2 }
0x1ef9   : > { %v3646_v4 = vadd.f32 %v3645_v3, %v3638_v61 }
0x1efb   : > { %v3647_v14 = vmul.f32 0.7978846, %v3646_v4 }
0x1efd   : > { %4660 = vtanh.f32 %v3647_v14 }
0x1f07   : > { %v4661_v6 = vpop.eup %4660 }
0x1f08   : > { %v3649_v7 = vadd.f32 1.0, %v4661_v6 }
0x1f0a   : > { %v3650_v8 = vmul.f32 0.5, %v3649_v7 }
0x1f0c   : > { %v3651_v22 = vmul.f32 %v3650_v8, %v3638_v61 }
0x1f0e   : > { %v3669_v9 = vpack.c.bf16 %v3651_v22, %v3651_v22 }
0x1f10   : > { %4472 = vmatmul.mubr.bf16.vlgmr.msra.gmra.mrb[36].mxu1 %v3669_v9 }
0x1fe3   : > { %v3760_v11 = vpop.f32.mrb[36].mxu1 }
0x1fe4   : > { %v3761_v12 = vadd.f32 %v4120_v10, %v3760_v11  ;;  %v4473_v13 = vpop.f32.mrb[37].mxu1 }
0x1fe5   : > { %v3763_v15 = vpop.f32.mrb[38].mxu1 }
0x1fe6   : > { %v4474_v16 = vpop.f32.mrb[39].mxu1  ;;  %v3766_v17 = vadd.f32 %v3761_v12, %v5399_v32 }
0x1fe8   : > { %v3770_v18 = vsel %vm3769_vm7, %v3766_v17, 0.0 }
0x1fe9   : > { %3771 = vadd.xlane.f32.xlu1 %v3770_v18 }
0x2076   : > { %v3772_v19 = vpop.xlane.xlu1 %3771 }
0x2077   : > { %v3773_v20 = vmul.f32 0.03125, %v3772_v19 }
0x2079   : > { %v3774_v21 = vsub.f32 %v3766_v17, %v3773_v20 }
0x207b   : > { %v3775_v23 = vmul.f32 %v3774_v21, %v3774_v21 }
0x207d   : > { %v3776_v5 = vsel %vm3769_vm7, %v3775_v23, 0.0 }
0x207e   : > { %3777 = vadd.xlane.f32.xlu0 %v3776_v5 }
0x210b   : > { %v3778_v24 = vpop.xlane.xlu0 %3777 }
0x210c   : > { %v3779_v25 = vmul.f32 0.03125, %v3778_v24 }
0x210e   : > { %v3780_v26 = vadd.f32 1e-05, %v3779_v25 }
0x2110   : > { %4662 = vrsqrt.f32 %v3780_v26 }
0x211a   : > { %v4663_v27 = vpop.eup %4662 }
0x211b   : > { %v3782_v29 = vmul.f32 %v4663_v27, %v3774_v21 }
0x211d   : > { %v3783_v31 = vmul.f32 %v3782_v29, %v3767_v28 }
0x211f   : > { %v3784_v32 = vadd.f32 %v3783_v31, %v3768_v30 }
0x2121   : > { %v3787_v33 = vsel %vm3769_vm7, %v3784_v32, 0.0 }
0x2122   : > { %3788 = vadd.xlane.f32.xlu1 %v3787_v33 }
0x21af   : > { %v3789_v34 = vpop.xlane.xlu1 %3788 }
0x21b0   : > { %v3790_v35 = vmul.f32 0.03125, %v3789_v34 }
0x21b2   : > { %v3791_v37 = vsub.f32 %v3784_v32, %v3790_v35 }
0x21b4   : > { %v3792_v38 = vmul.f32 %v3791_v37, %v3791_v37 }
0x21b6   : > { %v3793_v39 = vsel %vm3769_vm7, %v3792_v38, 0.0 }
0x21b7   : > { %3794 = vadd.xlane.f32.xlu1 %v3793_v39 }
0x2244   : > { %v3795_v46 = vpop.xlane.xlu1 %3794 }
0x2245   : > { %v3796_v47 = vmul.f32 0.03125, %v3795_v46 }
0x2247   : > { %v3797_v49 = vadd.f32 1e-05, %v3796_v47 }
0x2249   : > { %4664 = vrsqrt.f32 %v3797_v49 }
0x2253   : > { %v4665_v50 = vpop.eup %4664 }
0x2254   : > { %v3799_v52 = vmul.f32 %v4665_v50, %v3791_v37 }
0x2256   : > { %v3800_v36 = vmul.f32 %v3799_v52, %v3785_v51 }
0x2258   : > { %v3801_v54 = vadd.f32 %v3800_v36, %v3786_v53 }
0x225a   : > { %4484 = vmatmul.mubr.msk.f32.vlgmr.msra.gmra.mrb[42].mxu0 %vm1227_vm2, %v3801_v54 }
0x232d   : > { %v3876_v56 = vpop.f32.mrb[42].mxu0 }
0x232e   : > { %v3877_v57 = vadd.f32 %v3876_v56, %v3806_v55  ;;  %v4485_v58 = vpop.f32.mrb[43].mxu0 }
0x2330   : > { %v4130_v59 = vmul.f32 -1.442695, %v3877_v57 }
0x2332   : > { %4666 = vpow2.f32 %v4130_v59 }
0x233c   : > { %v4667_v60 = vpop.eup %4666 }
0x233d   : > { %v3883_v61 = vadd.f32 1.0, %v4667_v60 }
0x233f   : > { %4668 = vrcp.f32 %v3883_v61 }
0x2349   : > { %v4669_v62 = vpop.eup %4668 }
0x234a   : > { %3887 = vst.msk [vmem:[%s648_s0] sm:$0x1] %vm3886_vm8, %v4669_v62 }
0x234b   : > { %4683 = shalt.err (!%p4680_p3)
}
0x234c   : > { %s4684_s2 = scalar_lea.hbm %s5496_s4, 16  ;;  %s4688_s27 = scalar_lea.hbm %s5619_s1, 32 }
0x234d   : > { %p4685_p4 = scmp.ne.s32.totalorder %s5496_s4, %s4684_s2  ;;  %p4689_p9 = scmp.lt.u32.totalorder %s5496_s4, %s5619_s1 }
0x234e   : > { %p4690_p10 = scmp.lt.u32.totalorder %s4688_s27, %s4684_s2  ;;  %p4692_p12 = scmp.lt.u32.totalorder %s4684_s2, %s5496_s4 }
0x234f   : > { %p4686_p7 = pnand %p4685_p4, %p4897_p5 }
0x2350   : > { %p4691_p11 = por %p4690_p10, %p4689_p9 }
0x2351   : > { %p4687_p8 = pneg %p4686_p7 }
0x2352   : > { %p4693_p13 = por %p4692_p12, %p4691_p11 }
0x2354   : > { %p4694_p0 = pnand %p4693_p13, %p4687_p8 }
0x2356   : > { %4697 = shalt.err (!%p4694_p0)
}
0x2357   : > { %4493 = dma.vmem_to_hbm [thread:$0]  (%p4897_p5), %s5498_s23, 16, %s5496_s4, %s3889_s28  }
0x2358 PF: > { %s5620_s7 = sld [smem:[#allocation7_spill]]  ;;  %s5621_s30 = sld [smem:[#allocation5_spill]] }
0x235e   : > { %p4499_p1 = scmp.ge.s32.totalorder %s5620_s7, 2  ;;  %s3913_s29 = sand.u32 1, %s5621_s30  }
0x235f   : > { %s3914_s0 = scalar_lea.sflag [#allocation3], %s3913_s29 }
0x2360   : > { %p4496_p2 = pnand %p4499_p1, %p4901_p6 }
0x2362   : > { %4715 = dma.done.wait (!%p4496_p2), %s3914_s0, 16  }
0x2363   : > { %4717 = vsyncadd (!%p4496_p2), %s3914_s0, 4294967280  ;;  %s5623_s27 = sld [smem:[#allocation8_spill]]  ;;  %s5624_s26 = sld [smem:[#allocation6_spill]] }
0x2364   : > { %s5625_s6 = sld [smem:[#allocation9_spill]]  ;;  %s5626_s2 = smov %s4724_s25 }
0x2369   : > { %p31_p3 = scmp.ge.s32.totalorder %s5623_s27, 4   ;;  %s5627_s25 = smov %s5624_s26 }
0x236a   : > { %s5628_s26 = smov %s5625_s6 }
0x236b   :  { %33 = sbr.rel (!%p31_p3) target bundleno = 13 (0xd), region = 151 }
0x2372   :  { %3918 = vsyncpa [#allocation3], 1 }
0x2373   :  { %3920 = vsyncpa [#allocation3 + $0x1], 1 }

</bundles_post_ra>
